<compile_context>
chip_gen: v6e
topology: v6e:2x2x1
jax: 0.10.0
libtpu: 0.0.40
codegen_flags: <defaults>
</compile_context>

<pallas_src>
import functools

import jax
import jax.numpy as jnp
from jax.experimental import pallas as pl
from jax.experimental.pallas import tpu as pltpu


def _round_up(n, m):
    return ((n + m - 1) // m) * m


def mlp_block_kernel(x_ref, w1_ref, b1_ref, w2_ref, b2_ref, g_ref, beta_ref,
                     o_ref, *, negative_slope, eps, use_sin, matmul_dtype):
    # Linear 1: bf16 x bf16 -> f32 accumulate on the MXU, bias add in f32.
    h = jnp.dot(x_ref[...], w1_ref[...], preferred_element_type=jnp.float32)
    h = h + b1_ref[...]

    # ReLU (f32 on the VPU).
    h = jnp.maximum(h, 0.0)

    # Dropout(0.2): identity (eval-mode semantics).

    # Linear 2 (MXU) + bias.
    y = jnp.dot(h.astype(matmul_dtype), w2_ref[...],
                preferred_element_type=jnp.float32)
    y = y + b2_ref[...]

    # LayerNorm over the last dim (biased variance, matches torch.nn.LayerNorm).
    # Re-use `y` to keep the live vreg set small at large block_m.
    mean = jnp.mean(y, axis=-1, keepdims=True)
    y = y - mean
    var = jnp.mean(y * y, axis=-1, keepdims=True)
    y = y * jax.lax.rsqrt(var + eps)
    y = y * g_ref[...] + beta_ref[...]

    # LeakyReLU (negative_slope=0.01) or Sin (MLP_Block(sin=True)).
    if use_sin:
        out = jnp.sin(y)
    else:
        out = jnp.where(y >= 0.0, y, negative_slope * y)
    o_ref[...] = out.astype(o_ref.dtype)


def _build_call(b_pad, block_m, in_dim, out_dim, out_dtype, mm_dtype,
                negative_slope, eps, use_sin, single_buffer_weights):
    kernel = functools.partial(
        mlp_block_kernel, negative_slope=negative_slope, eps=eps,
        use_sin=use_sin, matmul_dtype=mm_dtype)

    res_kw = {}
    if single_buffer_weights:
        # Constant block index => no re-DMA per step; single-buffer to halve
        # the resident VMEM footprint (buys a bigger block_m on v7x).
        res_kw = dict(pipeline_mode=pl.Buffered(1))

    def resident(shape):
        return pl.BlockSpec(shape, lambda i: (0, 0), **res_kw)

    mm_bytes = jnp.dtype(mm_dtype).itemsize
    out_bytes = jnp.dtype(out_dtype).itemsize
    cost = pl.CostEstimate(
        flops=2 * b_pad * in_dim * out_dim + 2 * b_pad * out_dim * out_dim,
        transcendentals=b_pad,  # one rsqrt per row
        bytes_accessed=(b_pad * in_dim * mm_bytes
                        + in_dim * out_dim * mm_bytes
                        + out_dim * out_dim * mm_bytes
                        + 4 * out_dim * 4
                        + b_pad * out_dim * out_bytes),
    )

    return pl.pallas_call(
        kernel,
        out_shape=jax.ShapeDtypeStruct((b_pad, out_dim), out_dtype),
        grid_spec=pltpu.PrefetchScalarGridSpec(
            num_scalar_prefetch=0,
            grid=(b_pad // block_m,),
            in_specs=[
                pl.BlockSpec((block_m, in_dim), lambda i: (i, 0)),  # x tile
                resident((in_dim, out_dim)),                        # W1 (bf16)
                resident((1, out_dim)),                             # b1 (f32)
                resident((out_dim, out_dim)),                       # W2 (bf16)
                resident((1, out_dim)),                             # b2 (f32)
                resident((1, out_dim)),                             # gamma
                resident((1, out_dim)),                             # beta
            ],
            out_specs=pl.BlockSpec((block_m, out_dim), lambda i: (i, 0)),
        ),
        compiler_params=pltpu.CompilerParams(
            dimension_semantics=("parallel",),
            vmem_limit_bytes=48 * 1024 * 1024),  # explicit; fits v7x's 64 MiB
        cost_estimate=cost,
    )


def mlp_block(x, w1, b1, w2, b2, gamma, beta, *, block_m=256,
              negative_slope=0.01, eps=1e-5, use_sin=False,
              matmul_dtype=jnp.bfloat16):
    B, in_dim = x.shape
    out_dim = w1.shape[1]
    out_dtype = x.dtype

    # ---- choose the batch tile --------------------------------------------
    bm = max(8, min(_round_up(block_m, 8), _round_up(B, 8)))
    # Keep >= 2 grid steps when the batch allows it (megacore sharding).
    if _round_up(B, bm) // bm < 2 and B > 8:
        bm = max(8, _round_up((B + 1) // 2, 8))
    b_pad = _round_up(B, bm)

    # ---- cast matmul operands (bf16 into the MXU, f32 accumulation) --------
    x_mm = x.astype(matmul_dtype)
    w1_mm = w1.astype(matmul_dtype)
    w2_mm = w2.astype(matmul_dtype)
    b1_f = b1.reshape(1, out_dim).astype(jnp.float32)
    b2_f = b2.reshape(1, out_dim).astype(jnp.float32)
    g_f = gamma.reshape(1, out_dim).astype(jnp.float32)
    be_f = beta.reshape(1, out_dim).astype(jnp.float32)

    if b_pad != B:
        # Zero rows are LayerNorm-safe (rsqrt(0 + eps) is finite) and sliced off.
        x_mm = jnp.pad(x_mm, ((0, b_pad - B), (0, 0)))

    def run(single_buffer_weights):
        call = _build_call(b_pad, bm, in_dim, out_dim, out_dtype, matmul_dtype,
                           negative_slope, eps, use_sin, single_buffer_weights)
        return call(x_mm, w1_mm, b1_f, w2_mm, b2_f, g_f, be_f)

    try:
        out = jax.block_until_ready(run(single_buffer_weights=True))
    except Exception:
        # pipeline_mode=pl.Buffered(1) not supported on this jax build;
        # fall back to the default 2-deep buffering (still correct).
        out = run(single_buffer_weights=False)

    if b_pad != B:
        out = out[:B]
    return out


def reference_mlp_block(x, w1, b1, w2, b2, gamma, beta, *, negative_slope=0.01,
                        eps=1e-5, use_sin=False, matmul_dtype=jnp.float32):
    h = jnp.dot(x.astype(matmul_dtype), w1.astype(matmul_dtype),
                preferred_element_type=jnp.float32) + b1.reshape(1, -1)
    h = jnp.maximum(h, 0.0)
    y = jnp.dot(h.astype(matmul_dtype), w2.astype(matmul_dtype),
                preferred_element_type=jnp.float32) + b2.reshape(1, -1)
    mean = jnp.mean(y, axis=-1, keepdims=True)
    var = jnp.mean((y - mean) ** 2, axis=-1, keepdims=True)
    y = (y - mean) * jax.lax.rsqrt(var + eps)
    y = y * gamma.reshape(1, -1) + beta.reshape(1, -1)
    return jnp.sin(y) if use_sin else jnp.where(y >= 0.0, y, negative_slope * y)


if __name__ == "__main__":
    # Small MLP shapes; out_dim is a multiple of 128 (lane-dense stores) and
    # batch=512 gives a 2-step batch grid at block_m=256.
    batch, in_dim, out_dim = 512, 64, 128

    key = jax.random.PRNGKey(0)
    kx, kw1, kb1, kw2, kb2 = jax.random.split(key, 5)

    x = jax.random.normal(kx, (batch, in_dim), dtype=jnp.float32)

    # PyTorch Linear-style uniform init bounds.
    bound1 = 1.0 / float(jnp.sqrt(in_dim))
    w1 = jax.random.uniform(kw1, (in_dim, out_dim), jnp.float32, -bound1, bound1)
    b1 = jax.random.uniform(kb1, (out_dim,), jnp.float32, -bound1, bound1)

    bound2 = 1.0 / float(jnp.sqrt(out_dim))
    w2 = jax.random.uniform(kw2, (out_dim, out_dim), jnp.float32, -bound2, bound2)
    b2 = jax.random.uniform(kb2, (out_dim,), jnp.float32, -bound2, bound2)

    # LayerNorm affine params (PyTorch init: ones / zeros).
    gamma = jnp.ones((out_dim,), jnp.float32)
    beta = jnp.zeros((out_dim,), jnp.float32)

    # Main check (bf16 matmul operands, f32 accumulation + f32 epilogue).
    out = jax.block_until_ready(mlp_block(x, w1, b1, w2, b2, gamma, beta))
    ref = reference_mlp_block(x, w1, b1, w2, b2, gamma, beta,
                              matmul_dtype=jnp.bfloat16)
    assert out.shape == (batch, out_dim)
    assert jnp.allclose(out, ref, atol=2e-2, rtol=2e-2), "mismatch vs reference"

    # sin=True variant (SinLayer activation instead of LeakyReLU).
    out_sin = jax.block_until_ready(
        mlp_block(x, w1, b1, w2, b2, gamma, beta, use_sin=True))
    ref_sin = reference_mlp_block(x, w1, b1, w2, b2, gamma, beta, use_sin=True,
                                  matmul_dtype=jnp.bfloat16)
    assert jnp.allclose(out_sin, ref_sin, atol=2e-2, rtol=2e-2), "sin mismatch"

    # Ragged batch: exercises the padding path and the tile-size heuristic.
    x_small = x[:100]
    out_s = jax.block_until_ready(
        mlp_block(x_small, w1, b1, w2, b2, gamma, beta))
    ref_s = reference_mlp_block(x_small, w1, b1, w2, b2, gamma, beta,
                                matmul_dtype=jnp.bfloat16)
    assert out_s.shape == (100, out_dim)
    assert jnp.allclose(out_s, ref_s, atol=2e-2, rtol=2e-2), "ragged mismatch"

    print("KERNEL_OK")
</pallas_src>

<mosaic_0001>
module attributes {stable_mosaic.version = 11 : i64} {
  func.func @mlp_block_kernel(%arg0: i32, %arg1: memref<256x64xbf16, #tpu.memory_space<vmem>>, %arg2: memref<64x128xbf16, #tpu.memory_space<vmem>>, %arg3: memref<1x128xf32, #tpu.memory_space<vmem>>, %arg4: memref<128x128xbf16, #tpu.memory_space<vmem>>, %arg5: memref<1x128xf32, #tpu.memory_space<vmem>>, %arg6: memref<1x128xf32, #tpu.memory_space<vmem>>, %arg7: memref<1x128xf32, #tpu.memory_space<vmem>>, %arg8: memref<256x128xf32, #tpu.memory_space<vmem>>) attributes {dimension_semantics = [#tpu.dimension_semantics<parallel>], iteration_bounds = array<i64: 2>, scalar_prefetch = 0 : i64, scratch_operands = 0 : i64, tpu.core_type = #tpu.core_type<tc>, window_params = [{transform_indices = @transform_0, window_bounds = array<i64: 256, 64>}, {pipeline_mode = #tpu.pipeline_mode<synchronous>, transform_indices = @transform_1, window_bounds = array<i64: 64, 128>}, {pipeline_mode = #tpu.pipeline_mode<synchronous>, transform_indices = @transform_2, window_bounds = array<i64: 1, 128>}, {pipeline_mode = #tpu.pipeline_mode<synchronous>, transform_indices = @transform_3, window_bounds = array<i64: 128, 128>}, {pipeline_mode = #tpu.pipeline_mode<synchronous>, transform_indices = @transform_4, window_bounds = array<i64: 1, 128>}, {pipeline_mode = #tpu.pipeline_mode<synchronous>, transform_indices = @transform_5, window_bounds = array<i64: 1, 128>}, {pipeline_mode = #tpu.pipeline_mode<synchronous>, transform_indices = @transform_6, window_bounds = array<i64: 1, 128>}, {transform_indices = @transform_7, window_bounds = array<i64: 256, 128>}]} {
    %c0 = arith.constant 0 : index
    %c0_0 = arith.constant 0 : index
    %0 = vector.load %arg1[%c0, %c0_0] : memref<256x64xbf16, #tpu.memory_space<vmem>>, vector<256x64xbf16>
    %c0_1 = arith.constant 0 : index
    %c0_2 = arith.constant 0 : index
    %1 = vector.load %arg2[%c0_1, %c0_2] : memref<64x128xbf16, #tpu.memory_space<vmem>>, vector<64x128xbf16>
    %cst = arith.constant dense<0.000000e+00> : vector<256x128xf32>
    %2 = tpu.matmul %0, %1, %cst {dimension_numbers = #tpu.dot_dimension_numbers<[1], [0], [0], [1], [0, 0, 1, 1], [], []>} : vector<256x64xbf16>, vector<64x128xbf16>, vector<256x128xf32> -> vector<256x128xf32>
    %c0_3 = arith.constant 0 : index
    %c0_4 = arith.constant 0 : index
    %3 = vector.load %arg3[%c0_3, %c0_4] : memref<1x128xf32, #tpu.memory_space<vmem>>, vector<1x128xf32>
    %4 = vector.broadcast %3 : vector<1x128xf32> to vector<256x128xf32>
    %5 = arith.addf %2, %4 : vector<256x128xf32>
    %cst_5 = arith.constant 0.000000e+00 : f32
    %6 = vector.broadcast %cst_5 : f32 to vector<256x128xf32>
    %7 = arith.maximumf %5, %6 : vector<256x128xf32>
    %8 = arith.truncf %7 : vector<256x128xf32> to vector<256x128xbf16>
    %c0_6 = arith.constant 0 : index
    %c0_7 = arith.constant 0 : index
    %9 = vector.load %arg4[%c0_6, %c0_7] : memref<128x128xbf16, #tpu.memory_space<vmem>>, vector<128x128xbf16>
    %cst_8 = arith.constant dense<0.000000e+00> : vector<256x128xf32>
    %10 = tpu.matmul %8, %9, %cst_8 {dimension_numbers = #tpu.dot_dimension_numbers<[1], [0], [0], [1], [0, 0, 1, 1], [], []>} : vector<256x128xbf16>, vector<128x128xbf16>, vector<256x128xf32> -> vector<256x128xf32>
    %c0_9 = arith.constant 0 : index
    %c0_10 = arith.constant 0 : index
    %11 = vector.load %arg5[%c0_9, %c0_10] : memref<1x128xf32, #tpu.memory_space<vmem>>, vector<1x128xf32>
    %12 = vector.broadcast %11 : vector<1x128xf32> to vector<256x128xf32>
    %13 = arith.addf %10, %12 : vector<256x128xf32>
    %cst_11 = arith.constant dense<0.000000e+00> : vector<256xf32>
    %14 = vector.multi_reduction <add>, %13, %cst_11 [1] : vector<256x128xf32> to vector<256xf32>
    %15 = vector.shape_cast %14 : vector<256xf32> to vector<256x1xf32>
    %cst_12 = arith.constant 1.280000e+02 : f32
    %16 = vector.broadcast %cst_12 : f32 to vector<256x1xf32>
    %17 = arith.divf %15, %16 : vector<256x1xf32>
    %18 = vector.broadcast %17 : vector<256x1xf32> to vector<256x128xf32>
    %19 = arith.subf %13, %18 : vector<256x128xf32>
    %20 = arith.mulf %19, %19 : vector<256x128xf32>
    %cst_13 = arith.constant dense<0.000000e+00> : vector<256xf32>
    %21 = vector.multi_reduction <add>, %20, %cst_13 [1] : vector<256x128xf32> to vector<256xf32>
    %22 = vector.shape_cast %21 : vector<256xf32> to vector<256x1xf32>
    %cst_14 = arith.constant 1.280000e+02 : f32
    %23 = vector.broadcast %cst_14 : f32 to vector<256x1xf32>
    %24 = arith.divf %22, %23 : vector<256x1xf32>
    %cst_15 = arith.constant 9.99999974E-6 : f32
    %25 = vector.broadcast %cst_15 : f32 to vector<256x1xf32>
    %26 = arith.addf %24, %25 : vector<256x1xf32>
    %27 = math.rsqrt %26 : vector<256x1xf32>
    %28 = vector.broadcast %27 : vector<256x1xf32> to vector<256x128xf32>
    %29 = arith.mulf %19, %28 : vector<256x128xf32>
    %c0_16 = arith.constant 0 : index
    %c0_17 = arith.constant 0 : index
    %30 = vector.load %arg6[%c0_16, %c0_17] : memref<1x128xf32, #tpu.memory_space<vmem>>, vector<1x128xf32>
    %31 = vector.broadcast %30 : vector<1x128xf32> to vector<256x128xf32>
    %32 = arith.mulf %29, %31 : vector<256x128xf32>
    %c0_18 = arith.constant 0 : index
    %c0_19 = arith.constant 0 : index
    %33 = vector.load %arg7[%c0_18, %c0_19] : memref<1x128xf32, #tpu.memory_space<vmem>>, vector<1x128xf32>
    %34 = vector.broadcast %33 : vector<1x128xf32> to vector<256x128xf32>
    %35 = arith.addf %32, %34 : vector<256x128xf32>
    %cst_20 = arith.constant 0.000000e+00 : f32
    %36 = vector.broadcast %cst_20 : f32 to vector<256x128xf32>
    %37 = arith.cmpf oge, %35, %36 : vector<256x128xf32>
    %cst_21 = arith.constant 0.00999999977 : f32
    %38 = vector.broadcast %cst_21 : f32 to vector<256x128xf32>
    %39 = arith.mulf %38, %35 : vector<256x128xf32>
    %40 = arith.select %37, %35, %39 : vector<256x128xi1>, vector<256x128xf32>
    %c0_22 = arith.constant 0 : index
    %c0_23 = arith.constant 0 : index
    %41 = vector.load %arg8[%c0_22, %c0_23] : memref<256x128xf32, #tpu.memory_space<vmem>>, vector<256x128xf32>
    tpu.vector_store %arg8[%c0_22, %c0_23], %40 {strides = array<i32>} : memref<256x128xf32, #tpu.memory_space<vmem>>, vector<256x128xf32>,
    return
  }
  func.func @transform_0(%arg0: i32) -> (i32, i32) {
    %c0_i32 = arith.constant 0 : i32
    %c0_i32_0 = arith.constant 0 : i32
    return %arg0, %c0_i32 : i32, i32
  }
  func.func @transform_1(%arg0: i32) -> (i32, i32) {
    %c0_i32 = arith.constant 0 : i32
    %c0_i32_0 = arith.constant 0 : i32
    %c0_i32_1 = arith.constant 0 : i32
    return %c0_i32, %c0_i32_0 : i32, i32
  }
  func.func @transform_2(%arg0: i32) -> (i32, i32) {
    %c0_i32 = arith.constant 0 : i32
    %c0_i32_0 = arith.constant 0 : i32
    %c0_i32_1 = arith.constant 0 : i32
    return %c0_i32, %c0_i32_0 : i32, i32
  }
  func.func @transform_3(%arg0: i32) -> (i32, i32) {
    %c0_i32 = arith.constant 0 : i32
    %c0_i32_0 = arith.constant 0 : i32
    %c0_i32_1 = arith.constant 0 : i32
    return %c0_i32, %c0_i32_0 : i32, i32
  }
  func.func @transform_4(%arg0: i32) -> (i32, i32) {
    %c0_i32 = arith.constant 0 : i32
    %c0_i32_0 = arith.constant 0 : i32
    %c0_i32_1 = arith.constant 0 : i32
    return %c0_i32, %c0_i32_0 : i32, i32
  }
  func.func @transform_5(%arg0: i32) -> (i32, i32) {
    %c0_i32 = arith.constant 0 : i32
    %c0_i32_0 = arith.constant 0 : i32
    %c0_i32_1 = arith.constant 0 : i32
    return %c0_i32, %c0_i32_0 : i32, i32
  }
  func.func @transform_6(%arg0: i32) -> (i32, i32) {
    %c0_i32 = arith.constant 0 : i32
    %c0_i32_0 = arith.constant 0 : i32
    %c0_i32_1 = arith.constant 0 : i32
    return %c0_i32, %c0_i32_0 : i32, i32
  }
  func.func @transform_7(%arg0: i32) -> (i32, i32) {
    %c0_i32 = arith.constant 0 : i32
    %c0_i32_0 = arith.constant 0 : i32
    return %arg0, %c0_i32 : i32, i32
  }
}

module attributes {stable_mosaic.version = 11 : i64} {
  func.func @mlp_block_kernel(%arg0: i32, %arg1: memref<256x64xbf16, #tpu.memory_space<vmem>>, %arg2: memref<64x128xbf16, #tpu.memory_space<vmem>>, %arg3: memref<1x128xf32, #tpu.memory_space<vmem>>, %arg4: memref<128x128xbf16, #tpu.memory_space<vmem>>, %arg5: memref<1x128xf32, #tpu.memory_space<vmem>>, %arg6: memref<1x128xf32, #tpu.memory_space<vmem>>, %arg7: memref<1x128xf32, #tpu.memory_space<vmem>>, %arg8: memref<256x128xf32, #tpu.memory_space<vmem>>) attributes {dimension_semantics = [#tpu.dimension_semantics<parallel>], iteration_bounds = array<i64: 2>, scalar_prefetch = 0 : i64, scratch_operands = 0 : i64, tpu.core_type = #tpu.core_type<tc>, window_params = [{transform_indices = @transform_0, window_bounds = array<i64: 256, 64>}, {pipeline_mode = #tpu.pipeline_mode<synchronous>, transform_indices = @transform_1, window_bounds = array<i64: 64, 128>}, {pipeline_mode = #tpu.pipeline_mode<synchronous>, transform_indices = @transform_2, window_bounds = array<i64: 1, 128>}, {pipeline_mode = #tpu.pipeline_mode<synchronous>, transform_indices = @transform_3, window_bounds = array<i64: 128, 128>}, {pipeline_mode = #tpu.pipeline_mode<synchronous>, transform_indices = @transform_4, window_bounds = array<i64: 1, 128>}, {pipeline_mode = #tpu.pipeline_mode<synchronous>, transform_indices = @transform_5, window_bounds = array<i64: 1, 128>}, {pipeline_mode = #tpu.pipeline_mode<synchronous>, transform_indices = @transform_6, window_bounds = array<i64: 1, 128>}, {transform_indices = @transform_7, window_bounds = array<i64: 256, 128>}]} {
    %c0 = arith.constant 0 : index
    %c0_0 = arith.constant 0 : index
    %0 = vector.load %arg1[%c0, %c0_0] : memref<256x64xbf16, #tpu.memory_space<vmem>>, vector<256x64xbf16>
    %c0_1 = arith.constant 0 : index
    %c0_2 = arith.constant 0 : index
    %1 = vector.load %arg2[%c0_1, %c0_2] : memref<64x128xbf16, #tpu.memory_space<vmem>>, vector<64x128xbf16>
    %cst = arith.constant dense<0.000000e+00> : vector<256x128xf32>
    %2 = tpu.matmul %0, %1, %cst {dimension_numbers = #tpu.dot_dimension_numbers<[1], [0], [0], [1], [0, 0, 1, 1], [], []>} : vector<256x64xbf16>, vector<64x128xbf16>, vector<256x128xf32> -> vector<256x128xf32>
    %c0_3 = arith.constant 0 : index
    %c0_4 = arith.constant 0 : index
    %3 = vector.load %arg3[%c0_3, %c0_4] : memref<1x128xf32, #tpu.memory_space<vmem>>, vector<1x128xf32>
    %4 = vector.broadcast %3 : vector<1x128xf32> to vector<256x128xf32>
    %5 = arith.addf %2, %4 : vector<256x128xf32>
    %cst_5 = arith.constant 0.000000e+00 : f32
    %6 = vector.broadcast %cst_5 : f32 to vector<256x128xf32>
    %7 = arith.maximumf %5, %6 : vector<256x128xf32>
    %8 = arith.truncf %7 : vector<256x128xf32> to vector<256x128xbf16>
    %c0_6 = arith.constant 0 : index
    %c0_7 = arith.constant 0 : index
    %9 = vector.load %arg4[%c0_6, %c0_7] : memref<128x128xbf16, #tpu.memory_space<vmem>>, vector<128x128xbf16>
    %cst_8 = arith.constant dense<0.000000e+00> : vector<256x128xf32>
    %10 = tpu.matmul %8, %9, %cst_8 {dimension_numbers = #tpu.dot_dimension_numbers<[1], [0], [0], [1], [0, 0, 1, 1], [], []>} : vector<256x128xbf16>, vector<128x128xbf16>, vector<256x128xf32> -> vector<256x128xf32>
    %c0_9 = arith.constant 0 : index
    %c0_10 = arith.constant 0 : index
    %11 = vector.load %arg5[%c0_9, %c0_10] : memref<1x128xf32, #tpu.memory_space<vmem>>, vector<1x128xf32>
    %12 = vector.broadcast %11 : vector<1x128xf32> to vector<256x128xf32>
    %13 = arith.addf %10, %12 : vector<256x128xf32>
    %cst_11 = arith.constant dense<0.000000e+00> : vector<256xf32>
    %14 = vector.multi_reduction <add>, %13, %cst_11 [1] : vector<256x128xf32> to vector<256xf32>
    %15 = vector.shape_cast %14 : vector<256xf32> to vector<256x1xf32>
    %cst_12 = arith.constant 1.280000e+02 : f32
    %16 = vector.broadcast %cst_12 : f32 to vector<256x1xf32>
    %17 = arith.divf %15, %16 : vector<256x1xf32>
    %18 = vector.broadcast %17 : vector<256x1xf32> to vector<256x128xf32>
    %19 = arith.subf %13, %18 : vector<256x128xf32>
    %20 = arith.mulf %19, %19 : vector<256x128xf32>
    %cst_13 = arith.constant dense<0.000000e+00> : vector<256xf32>
    %21 = vector.multi_reduction <add>, %20, %cst_13 [1] : vector<256x128xf32> to vector<256xf32>
    %22 = vector.shape_cast %21 : vector<256xf32> to vector<256x1xf32>
    %cst_14 = arith.constant 1.280000e+02 : f32
    %23 = vector.broadcast %cst_14 : f32 to vector<256x1xf32>
    %24 = arith.divf %22, %23 : vector<256x1xf32>
    %cst_15 = arith.constant 9.99999974E-6 : f32
    %25 = vector.broadcast %cst_15 : f32 to vector<256x1xf32>
    %26 = arith.addf %24, %25 : vector<256x1xf32>
    %27 = math.rsqrt %26 : vector<256x1xf32>
    %28 = vector.broadcast %27 : vector<256x1xf32> to vector<256x128xf32>
    %29 = arith.mulf %19, %28 : vector<256x128xf32>
    %c0_16 = arith.constant 0 : index
    %c0_17 = arith.constant 0 : index
    %30 = vector.load %arg6[%c0_16, %c0_17] : memref<1x128xf32, #tpu.memory_space<vmem>>, vector<1x128xf32>
    %31 = vector.broadcast %30 : vector<1x128xf32> to vector<256x128xf32>
    %32 = arith.mulf %29, %31 : vector<256x128xf32>
    %c0_18 = arith.constant 0 : index
    %c0_19 = arith.constant 0 : index
    %33 = vector.load %arg7[%c0_18, %c0_19] : memref<1x128xf32, #tpu.memory_space<vmem>>, vector<1x128xf32>
    %34 = vector.broadcast %33 : vector<1x128xf32> to vector<256x128xf32>
    %35 = arith.addf %32, %34 : vector<256x128xf32>
    %cst_20 = arith.constant 0.000000e+00 : f32
    %36 = vector.broadcast %cst_20 : f32 to vector<256x128xf32>
    %37 = arith.cmpf oge, %35, %36 : vector<256x128xf32>
    %cst_21 = arith.constant 0.00999999977 : f32
    %38 = vector.broadcast %cst_21 : f32 to vector<256x128xf32>
    %39 = arith.mulf %38, %35 : vector<256x128xf32>
    %40 = arith.select %37, %35, %39 : vector<256x128xi1>, vector<256x128xf32>
    %c0_22 = arith.constant 0 : index
    %c0_23 = arith.constant 0 : index
    %41 = vector.load %arg8[%c0_22, %c0_23] : memref<256x128xf32, #tpu.memory_space<vmem>>, vector<256x128xf32>
    tpu.vector_store %arg8[%c0_22, %c0_23], %40 {strides = array<i32>} : memref<256x128xf32, #tpu.memory_space<vmem>>, vector<256x128xf32>,
    return
  }
  func.func @transform_0(%arg0: i32) -> (i32, i32) {
    %c0_i32 = arith.constant 0 : i32
    %c0_i32_0 = arith.constant 0 : i32
    return %arg0, %c0_i32 : i32, i32
  }
  func.func @transform_1(%arg0: i32) -> (i32, i32) {
    %c0_i32 = arith.constant 0 : i32
    %c0_i32_0 = arith.constant 0 : i32
    %c0_i32_1 = arith.constant 0 : i32
    return %c0_i32, %c0_i32_0 : i32, i32
  }
  func.func @transform_2(%arg0: i32) -> (i32, i32) {
    %c0_i32 = arith.constant 0 : i32
    %c0_i32_0 = arith.constant 0 : i32
    %c0_i32_1 = arith.constant 0 : i32
    return %c0_i32, %c0_i32_0 : i32, i32
  }
  func.func @transform_3(%arg0: i32) -> (i32, i32) {
    %c0_i32 = arith.constant 0 : i32
    %c0_i32_0 = arith.constant 0 : i32
    %c0_i32_1 = arith.constant 0 : i32
    return %c0_i32, %c0_i32_0 : i32, i32
  }
  func.func @transform_4(%arg0: i32) -> (i32, i32) {
    %c0_i32 = arith.constant 0 : i32
    %c0_i32_0 = arith.constant 0 : i32
    %c0_i32_1 = arith.constant 0 : i32
    return %c0_i32, %c0_i32_0 : i32, i32
  }
  func.func @transform_5(%arg0: i32) -> (i32, i32) {
    %c0_i32 = arith.constant 0 : i32
    %c0_i32_0 = arith.constant 0 : i32
    %c0_i32_1 = arith.constant 0 : i32
    return %c0_i32, %c0_i32_0 : i32, i32
  }
  func.func @transform_6(%arg0: i32) -> (i32, i32) {
    %c0_i32 = arith.constant 0 : i32
    %c0_i32_0 = arith.constant 0 : i32
    %c0_i32_1 = arith.constant 0 : i32
    return %c0_i32, %c0_i32_0 : i32, i32
  }
  func.func @transform_7(%arg0: i32) -> (i32, i32) {
    %c0_i32 = arith.constant 0 : i32
    %c0_i32_0 = arith.constant 0 : i32
    return %arg0, %c0_i32 : i32, i32
  }
}

</mosaic_0001>

<bundles_post_ra>
// kernel: tpu_custom_call.1
= control target key start
LH: loop header
LB: loop body
LE: loop exit
PB: predicated region body
PF: predicated region fallthrough
CT: control target
= control target key end

     0   :  { %12 = vsyncpa [#allocation3], 0  ;;  %s2650_s0 = inlined_call_operand.vmem [shape: bf16[512,64], index: 0, kind: input, shape index: {}]   ;;  %s2651_s1 = inlined_call_operand.vmem [shape: bf16[64,128], index: 1, kind: input, shape index: {}]   ;;  %s2652_s2 = inlined_call_operand.vmem [shape: f32[1,128], index: 2, kind: input, shape index: {}]   ;;  %s2653_s3 = inlined_call_operand.vmem [shape: bf16[128,128], index: 3, kind: input, shape index: {}]   ;;  %s2654_s4 = inlined_call_operand.vmem [shape: f32[1,128], index: 4, kind: input, shape index: {}]   ;;  %s2655_s5 = inlined_call_operand.vmem [shape: f32[1,128], index: 5, kind: input, shape index: {}]   ;;  %s2656_s6 = inlined_call_operand.vmem [shape: f32[1,128], index: 6, kind: input, shape index: {}]   ;;  %s2657_s7 = inlined_call_operand.hbm [shape: f32[512,128], index: 7, kind: output, shape index: {}]  }
   0x1   :  { %14 = vsyncpa [#allocation3 + $0x1], 0  ;;  %s2004_s24 = smov 0   ;;  %s2006_s25 = smov 0  }
   0x2   :  { %s2008_s26 = smov 0   ;;  %s2010_s27 = smov 0  }
   0x3 LB: > { %s2025_s28 = sadd.s32 4294967295, %s1959_s27   ;;  %s1557_s29 = sadd.s32 4294967294, %s1959_s27   ;;  %s1959_s27 = sphi %s2010_s27, %s2663_s27   ;;  %s1955_s26 = sphi %s2008_s26, %s2662_s26   ;;  %s1951_s25 = sphi %s2006_s25, %s2661_s25   ;;  %s1947_s24 = sphi %s2004_s24, %s2660_s24  }
   0x4   : > { %s2029_s30 = sadd.s32 1, %s1959_s27   ;;  %s179_s8 = sadd.s32 1, %s1955_s26 }
   0x5   : > { %s176_s9 = ssub.s32 %s1959_s27, %s2029_s30  ;;  %p189_p0 = scmp.ne.s32.totalorder %s1955_s26, %s1951_s25 }
   0x6   : > { %p177_p1 = scmp.eq.s32.totalorder %s176_s9, 0  ;;  %p190_p2 = scmp.eq.s32.totalorder %s2025_s28, 1 }
   0x7   : > { %p195_p3 = scmp.ne.s32.totalorder %s1951_s25, %s1947_s24  ;;  %p196_p4 = scmp.eq.s32.totalorder %s1557_s29, 1 }
   0x8   : > { %s2040_s10 = scalar_select %p177_p1, %s1955_s26, %s179_s8  }
   0x9   : > { %p2042_p5 = por %p190_p2, %p189_p0  ;;  %p2046_p6 = por %p196_p4, %p195_p3 }
   0xa   : > { %p1560_p7 = scmp.ge.s32.totalorder %s1959_s27, 1  ;;  %p241_p8 = scmp.lt.s32.totalorder %s1959_s27, 3 }
   0xc   : > { %p242_p9 = pnand %p1560_p7, %p241_p8 }
   0xd   : > { %s1562_s15 = sshll.u32 (!%p242_p9), %s2025_s28, 5  ;;  %s270_s20 = sand.u32 (!%p242_p9), 1, %s1951_s25  }
   0xe   : > { %245 = sbr.rel (%p242_p9) target bundleno = 832 (0x340), region = 48  ;;  %p274_p10 = scmp.lt.s32.totalorder (!%p242_p9), %s1562_s15, 63 }
   0xf   : > { %s1561_s23 = sshll.u32 (!%p242_p9), %s270_s20, 8  ;;  %s1617_s9 = sshll.u32 (!%p242_p9), %s2025_s28, 12 }
  0x10   : > { %s2478_s29 = scalar_lea.vmem (!%p242_p9), [#allocation2], %s1561_s23  ;;  %s2603_s16 = scalar_lea.hbm (!%p242_p9), %s2657_s7, %s1617_s9 }
  0x11   : > { %s1495_s13 = sshll.u32 (!%p242_p9), %s2478_s29, 4  ;;  %s2610_s28 = scalar_lea.sflag (!%p242_p9), [#allocation3], %s270_s20  ;;  %s2605_s13 = int_to_ptr.vmem [resolvable:$true] %s1495_s13 }
  0x12   : > { %s1961_s17 = smov (!%p242_p9), [#allocation2]  }
  0x13   : > { %v1807_v0 = vld [vmem:[%s2651_s1 + $0x18] sm:$0xff]   ;;  %v1808_v1 = vld [vmem:[%s2651_s1 + $0x10] sm:$0xff]   ;;  %v1809_v2 = vld [vmem:[%s2651_s1 + $0x8] sm:$0xff]   ;;  %s2665_s15 = smov (!%p274_p10, %s1562_s15), 63  ;;  %vm432_vm0 = vcmask 523264   ;;  %s1903_s18 = sshll.u32 %s1961_s17, 4  ;;  %s1904_s18 = int_to_ptr.vmem [resolvable:$false] %s1903_s18 }
  0x14   : > { %1662 = vmatprep.subr.bf16.mxu0 %v1807_v0  ;;  %v1827_v3 = vld [vmem:[%s2653_s3 + $0x38] sm:$0xff]   ;;  %s1563_s22 = sshll.u32 %s2665_s15, 2  ;;  %v1828_v4 = vld [vmem:[%s2653_s3 + $0x30] sm:$0xff]   ;;  %v1810_v6 = vld [vmem:[%s2651_s1] sm:$0xff]   ;;  %s1905_s19 = scalar_lea.vmem %s1904_s18, 8192 }
  0x15   : > { %1663 = vmatpush3.bf16.msra.mxu0 %v1807_v0  ;;  %s2068_s8 = scalar_lea.vmem %s2650_s0, %s1563_s22  ;;  %1750 = vmatprep.subr.bf16.mxu1 %v1827_v3  ;;  %v1829_v7 = vld [vmem:[%s2653_s3 + $0x28] sm:$0xff]   ;;  %v1830_v12 = vld [vmem:[%s2653_s3 + $0x20] sm:$0xff]   ;;  %v1831_v13 = vld [vmem:[%s2653_s3 + $0x18] sm:$0xff]   ;;  %p1906_p0 = scmp.lt.s32.totalorder %s2605_s13, %s1904_s18 }
  0x16   : > { %1664 = vmatprep.subr.bf16.mxu0 %v1808_v1  ;;  %v1811_v5 = vld [vmem:[%s2068_s8] sm:$0xff]   ;;  %1758 = vmatpush3.bf16.msra.mxu1 %v1827_v3  ;;  %v1812_v8 = vld [vmem:[%s2068_s8 + $0x8] sm:$0xff]   ;;  %v1813_v9 = vld [vmem:[%s2068_s8 + $0x10] sm:$0xff]  }
  0x17   : > { %1751 = vmatprep.subr.bf16.mxu1 %v1828_v4  ;;  %1670 = vmatprep.mubr.msk.bf16.mxu0 %vm432_vm0, %v1811_v5  ;;  %v1814_v10 = vld [vmem:[%s2068_s8 + $0x18] sm:$0xff]   ;;  %v1815_v11 = vld [vmem:[%s2068_s8 + $0x20] sm:$0xff]   ;;  %v1832_v14 = vld [vmem:[%s2653_s3 + $0x10] sm:$0xff]  }
  0x18   : > { %v1816_v15 = vld [vmem:[%s2068_s8 + $0x28] sm:$0xff]   ;;  %v1817_v16 = vld [vmem:[%s2068_s8 + $0x30] sm:$0xff]   ;;  %v1818_v18 = vld [vmem:[%s2068_s8 + $0x38] sm:$0xff]  }
  0x19   : > { %1665 = vmatpush3.bf16.msra.mxu0 %v1808_v1  ;;  %v1833_v17 = vld [vmem:[%s2653_s3 + $0x8] sm:$0xff]   ;;  %v1819_v19 = vld [vmem:[%s2068_s8 + $0x40] sm:$0xff]   ;;  %v1821_v21 = vld [vmem:[%s2068_s8 + $0x50] sm:$0xff]  }
  0x1a   : > { %1666 = vmatprep.subr.bf16.mxu0 %v1809_v2  ;;  %1759 = vmatpush3.bf16.msra.mxu1 %v1828_v4  ;;  %v1820_v20 = vld [vmem:[%s2068_s8 + $0x48] sm:$0xff]   ;;  %v1822_v22 = vld [vmem:[%s2068_s8 + $0x58] sm:$0xff]   ;;  %v1823_v23 = vld [vmem:[%s2068_s8 + $0x60] sm:$0xff]  }
  0x1b   : > { %1752 = vmatprep.subr.bf16.mxu1 %v1829_v7  ;;  %v1824_v24 = vld [vmem:[%s2068_s8 + $0x68] sm:$0xff]   ;;  %v1825_v25 = vld [vmem:[%s2068_s8 + $0x70] sm:$0xff]   ;;  %v1826_v26 = vld [vmem:[%s2068_s8 + $0x78] sm:$0xff]   ;;  %s1899_s8 = scalar_lea.vmem %s2605_s13, 4096 }
  0x1c   : > { %v1834_v27 = vld [vmem:[%s2653_s3] sm:$0xff]   ;;  %p1900_p11 = scmp.ne.s32.totalorder %s2605_s13, %s1899_s8  ;;  %p1907_p1 = scmp.lt.s32.totalorder %s1905_s19, %s1899_s8 }
  0x1d   : > { %1667 = vmatpush3.bf16.msra.mxu0 %v1809_v2  ;;  %v2129_v30 = vld [vmem:[%s2652_s2] ss:$0 sm:$0xff] }
  0x1e   : > { %1668 = vmatprep.subr.bf16.mxu0 %v1810_v6  ;;  %1760 = vmatpush3.bf16.msra.mxu1 %v1829_v7  ;;  %p1901_p12 = pnand %p1900_p11, %p2042_p5  ;;  %p1908_p2 = por %p1907_p1, %p1906_p0 }
  0x1f   : > { %1753 = vmatprep.subr.bf16.mxu1 %v1830_v12 }
  0x20   : > { %p1902_p13 = pneg %p1901_p12 }
  0x21   : > { %1669 = vmatpush3.bf16.msra.mxu0 %v1810_v6 }
  0x22   : > { %1702 = vmatprep.subr.bf16.mxu0 %v1827_v3  ;;  %1761 = vmatpush3.bf16.msra.mxu1 %v1830_v12  ;;  %p1909_p3 = pnand %p1908_p2, %p1902_p13 }
  0x23   : > { %1754 = vmatprep.subr.bf16.mxu1 %v1831_v13 }
  0x24   : > { %1671 = vmatmul.mubr.msk.bf16.vlgmr.msra.gmra.mxu0 %vm432_vm0, %v1812_v8 }
  0x25   : > { %1674 = vmatprep.mubr.msk.bf16.mxu0 %vm432_vm0, %v1813_v9  ;;  %1703 = vmatpush3.bf16.msra.mxu0 %v1827_v3 }
  0x26   : > { %1704 = vmatprep.subr.bf16.mxu0 %v1828_v4  ;;  %1762 = vmatpush3.bf16.msra.mxu1 %v1831_v13 }
  0x27   : > { %1755 = vmatprep.subr.bf16.mxu1 %v1832_v14 }
  0x29   : > { %1705 = vmatpush3.bf16.msra.mxu0 %v1828_v4 }
  0x2a   : > { %1706 = vmatprep.subr.bf16.mxu0 %v1829_v7  ;;  %1763 = vmatpush3.bf16.msra.mxu1 %v1832_v14 }
  0x2b   : > { %1756 = vmatprep.subr.bf16.mxu1 %v1833_v17 }
  0x2c   : > { %1675 = vmatmul.mubr.msk.bf16.gmra.mxu0 %vm432_vm0, %v1814_v10 }
  0x2d   : > { %1678 = vmatprep.mubr.msk.bf16.mxu0 %vm432_vm0, %v1815_v11  ;;  %1707 = vmatpush3.bf16.msra.mxu0 %v1829_v7 }
  0x2e   : > { %1708 = vmatprep.subr.bf16.mxu0 %v1830_v12  ;;  %1764 = vmatpush3.bf16.msra.mxu1 %v1833_v17 }
  0x2f   : > { %1757 = vmatprep.subr.bf16.mxu1 %v1834_v27 }
  0x31   : > { %1709 = vmatpush3.bf16.msra.mxu0 %v1830_v12 }
  0x32   : > { %1710 = vmatprep.subr.bf16.mxu0 %v1831_v13  ;;  %1765 = vmatpush3.bf16.msra.mxu1 %v1834_v27 }
  0x34   : > { %1679 = vmatmul.mubr.msk.bf16.gmra.mxu0 %vm432_vm0, %v1816_v15 }
  0x35   : > { %1682 = vmatprep.mubr.msk.bf16.mxu0 %vm432_vm0, %v1817_v16  ;;  %1711 = vmatpush3.bf16.msra.mxu0 %v1831_v13 }
  0x36   : > { %1712 = vmatprep.subr.bf16.mxu0 %v1832_v14 }
  0x39   : > { %1713 = vmatpush3.bf16.msra.mxu0 %v1832_v14 }
  0x3a   : > { %1714 = vmatprep.subr.bf16.mxu0 %v1833_v17 }
  0x3c   : > { %1683 = vmatmul.mubr.msk.bf16.gmra.mxu0 %vm432_vm0, %v1818_v18 }
  0x3d   : > { %1686 = vmatprep.mubr.msk.bf16.mxu0 %vm432_vm0, %v1819_v19  ;;  %1715 = vmatpush3.bf16.msra.mxu0 %v1833_v17 }
  0x3e   : > { %1716 = vmatprep.subr.bf16.mxu0 %v1834_v27 }
  0x41   : > { %1717 = vmatpush3.bf16.msra.mxu0 %v1834_v27 }
  0x44   : > { %1687 = vmatmul.mubr.msk.bf16.gmra.mxu0 %vm432_vm0, %v1820_v20 }
  0x45   : > { %1690 = vmatprep.mubr.msk.bf16.mxu0 %vm432_vm0, %v1821_v21 }
  0x4c   : > { %1691 = vmatmul.mubr.msk.bf16.gmra.mxu0 %vm432_vm0, %v1822_v22 }
  0x4d   : > { %1694 = vmatprep.mubr.msk.bf16.mxu0 %vm432_vm0, %v1823_v23 }
  0x54   : > { %1695 = vmatmul.mubr.msk.bf16.gmra.mxu0 %vm432_vm0, %v1824_v24 }
  0x55   : > { %1698 = vmatprep.mubr.msk.bf16.mxu0 %vm432_vm0, %v1825_v25 }
  0x5c   : > { %1699 = vmatmul.mubr.msk.bf16.gmra.mxu0 %vm432_vm0, %v1826_v26 }
  0xe4   : > { %v1672_v28 = vpop.f32.mrf.mxu0 }
  0xe5   : > { %v524_v34 = vadd.f32 %v1672_v28, %v2129_v30 }
  0xe6   : > { %v515_v29 = vpop.f32.mrf.mxu0 }
  0xe7   : > { %v516_v32 = vadd.f32 %v2129_v30, %v515_v29  ;;  %v644_v41 = vmax.f32 %v524_v34, 0.0 }
  0xe8   : > { %v1673_v31 = vpop.f32.mrf.mxu0 }
  0xe9   : > { %v527_v33 = vadd.f32 %v1673_v31, %v2129_v30  ;;  %v642_v39 = vmax.f32 %v516_v32, 0.0 }
  0xea   : > { %v518_v35 = vpop.f32.mrf.mxu0 }
  0xeb   : > { %v519_v36 = vadd.f32 %v2129_v30, %v518_v35  ;;  %v645_v37 = vmax.f32 %v527_v33, 0.0 }
  0xec   : > { %v1676_v38 = vpop.f32.mrf.mxu0 }
  0xed   : > { %v643_v40 = vmax.f32 %v519_v36, 0.0  ;;  %v675_v44 = vpack.c.bf16 %v645_v37, %v644_v41  ;;  %v540_v48 = vadd.f32 %v1676_v38, %v2129_v30 }
  0xee   : > { %v531_v42 = vpop.f32.mrf.mxu0 }
  0xef   : > { %v674_v43 = vpack.c.bf16 %v643_v40, %v642_v39  ;;  %v532_v46 = vadd.f32 %v2129_v30, %v531_v42  ;;  %v648_v55 = vmax.f32 %v540_v48, 0.0 }
  0xf0   : > { %v1677_v45 = vpop.f32.mrf.mxu0 }
  0xf1   : > { %v543_v47 = vadd.f32 %v1677_v45, %v2129_v30  ;;  %1718 = vmatprep.mubr.bf16.mxu0 %v674_v43  ;;  %v646_v53 = vmax.f32 %v532_v46, 0.0 }
  0xf2   : > { %v534_v49 = vpop.f32.mrf.mxu0  ;;  %1719 = vmatmul.mubr.bf16.vlgmr.msra.gmra.mxu0 %v675_v44 }
  0xf3   : > { %v535_v50 = vadd.f32 %v2129_v30, %v534_v49  ;;  %v649_v51 = vmax.f32 %v543_v47, 0.0 }
  0xf4   : > { %v1680_v52 = vpop.f32.mrf.mxu0 }
  0xf5   : > { %v647_v54 = vmax.f32 %v535_v50, 0.0  ;;  %v677_v58 = vpack.c.bf16 %v649_v51, %v648_v55  ;;  %v556_v62 = vadd.f32 %v1680_v52, %v2129_v30 }
  0xf6   : > { %v547_v56 = vpop.f32.mrf.mxu0 }
  0xf7   : > { %v676_v57 = vpack.c.bf16 %v647_v54, %v646_v53  ;;  %v548_v60 = vadd.f32 %v2129_v30, %v547_v56  ;;  %v652_v5 = vmax.f32 %v556_v62, 0.0 }
  0xf8   : > { %v1681_v59 = vpop.f32.mrf.mxu0 }
  0xf9   : > { %v559_v61 = vadd.f32 %v1681_v59, %v2129_v30  ;;  %1722 = vmatprep.mubr.bf16.mxu1 %v676_v57  ;;  %v650_v3 = vmax.f32 %v548_v60, 0.0 }
  0xfa   : > { %v550_v63 = vpop.f32.mrf.mxu0  ;;  %1723 = vmatmul.mubr.bf16.vlgmr.msra.gmra.mxu1 %v677_v58 }
  0xfb   : > { %v551_v0 = vadd.f32 %v2129_v30, %v550_v63  ;;  %v653_v1 = vmax.f32 %v559_v61, 0.0 }
  0xfc   : > { %v1684_v2 = vpop.f32.mrf.mxu0 }
  0xfd   : > { %v651_v4 = vmax.f32 %v551_v0, 0.0  ;;  %v679_v8 = vpack.c.bf16 %v653_v1, %v652_v5  ;;  %v572_v12 = vadd.f32 %v1684_v2, %v2129_v30 }
  0xfe   : > { %v563_v6 = vpop.f32.mrf.mxu0 }
  0xff   : > { %v678_v7 = vpack.c.bf16 %v651_v4, %v650_v3  ;;  %v564_v10 = vadd.f32 %v2129_v30, %v563_v6  ;;  %v656_v19 = vmax.f32 %v572_v12, 0.0 }
 0x100   : > { %v1685_v9 = vpop.f32.mrf.mxu0 }
 0x101   : > { %v575_v11 = vadd.f32 %v1685_v9, %v2129_v30  ;;  %1726 = vmatprep.mubr.bf16.mxu1 %v678_v7  ;;  %v654_v17 = vmax.f32 %v564_v10, 0.0 }
 0x102   : > { %v566_v13 = vpop.f32.mrf.mxu0  ;;  %1727 = vmatmul.mubr.bf16.gmra.mxu1 %v679_v8 }
 0x103   : > { %v567_v14 = vadd.f32 %v2129_v30, %v566_v13  ;;  %v657_v15 = vmax.f32 %v575_v11, 0.0 }
 0x104   : > { %v1688_v16 = vpop.f32.mrf.mxu0 }
 0x105   : > { %v655_v18 = vmax.f32 %v567_v14, 0.0  ;;  %v681_v22 = vpack.c.bf16 %v657_v15, %v656_v19  ;;  %v588_v26 = vadd.f32 %v1688_v16, %v2129_v30  ;;  %v2166_v14 = vld [vmem:[%s2654_s4] ss:$0 sm:$0xff] }
 0x106   : > { %v579_v20 = vpop.f32.mrf.mxu0 }
 0x107   : > { %v680_v21 = vpack.c.bf16 %v655_v18, %v654_v17  ;;  %v580_v24 = vadd.f32 %v2129_v30, %v579_v20  ;;  %v660_v34 = vmax.f32 %v588_v26, 0.0 }
 0x108   : > { %v1689_v23 = vpop.f32.mrf.mxu0 }
 0x109   : > { %v591_v25 = vadd.f32 %v1689_v23, %v2129_v30  ;;  %1730 = vmatprep.mubr.bf16.mxu1 %v680_v21  ;;  %v658_v32 = vmax.f32 %v580_v24, 0.0 }
 0x10a   : > { %v582_v27 = vpop.f32.mrf.mxu0  ;;  %1731 = vmatmul.mubr.bf16.gmra.mxu1 %v681_v22 }
 0x10b   : > { %v583_v28 = vadd.f32 %v2129_v30, %v582_v27  ;;  %v661_v29 = vmax.f32 %v591_v25, 0.0 }
 0x10c   : > { %v1692_v31 = vpop.f32.mrf.mxu0 }
 0x10d   : > { %v659_v33 = vmax.f32 %v583_v28, 0.0  ;;  %v683_v37 = vpack.c.bf16 %v661_v29, %v660_v34  ;;  %v604_v41 = vadd.f32 %v1692_v31, %v2129_v30 }
 0x10e   : > { %v595_v35 = vpop.f32.mrf.mxu0 }
 0x10f   : > { %v682_v36 = vpack.c.bf16 %v659_v33, %v658_v32  ;;  %v596_v39 = vadd.f32 %v2129_v30, %v595_v35  ;;  %v664_v48 = vmax.f32 %v604_v41, 0.0 }
 0x110   : > { %v1693_v38 = vpop.f32.mrf.mxu0 }
 0x111   : > { %v607_v40 = vadd.f32 %v1693_v38, %v2129_v30  ;;  %1734 = vmatprep.mubr.bf16.mxu1 %v682_v36  ;;  %v662_v46 = vmax.f32 %v596_v39, 0.0 }
 0x112   : > { %v598_v42 = vpop.f32.mrf.mxu0  ;;  %1735 = vmatmul.mubr.bf16.gmra.mxu1 %v683_v37 }
 0x113   : > { %v599_v43 = vadd.f32 %v2129_v30, %v598_v42  ;;  %v665_v44 = vmax.f32 %v607_v40, 0.0 }
 0x114   : > { %v1696_v45 = vpop.f32.mrf.mxu0 }
 0x115   : > { %v663_v47 = vmax.f32 %v599_v43, 0.0  ;;  %v685_v51 = vpack.c.bf16 %v665_v44, %v664_v48  ;;  %v620_v55 = vadd.f32 %v1696_v45, %v2129_v30 }
 0x116   : > { %v611_v49 = vpop.f32.mrf.mxu0 }
 0x117   : > { %v684_v50 = vpack.c.bf16 %v663_v47, %v662_v46  ;;  %v612_v53 = vadd.f32 %v2129_v30, %v611_v49  ;;  %v668_v62 = vmax.f32 %v620_v55, 0.0 }
 0x118   : > { %v1697_v52 = vpop.f32.mrf.mxu0 }
 0x119   : > { %v623_v54 = vadd.f32 %v1697_v52, %v2129_v30  ;;  %1738 = vmatprep.mubr.bf16.mxu1 %v684_v50  ;;  %v666_v60 = vmax.f32 %v612_v53, 0.0 }
 0x11a   : > { %v614_v56 = vpop.f32.mrf.mxu0  ;;  %1739 = vmatmul.mubr.bf16.gmra.mxu1 %v685_v51 }
 0x11b   : > { %v615_v57 = vadd.f32 %v2129_v30, %v614_v56  ;;  %v669_v58 = vmax.f32 %v623_v54, 0.0 }
 0x11c   : > { %v1700_v59 = vpop.f32.mrf.mxu0 }
 0x11d   : > { %v667_v61 = vmax.f32 %v615_v57, 0.0  ;;  %v687_v1 = vpack.c.bf16 %v669_v58, %v668_v62  ;;  %v636_v5 = vadd.f32 %v1700_v59, %v2129_v30 }
 0x11e   : > { %v627_v63 = vpop.f32.mrf.mxu0 }
 0x11f   : > { %v686_v0 = vpack.c.bf16 %v667_v61, %v666_v60  ;;  %v628_v3 = vadd.f32 %v2129_v30, %v627_v63  ;;  %v672_v11 = vmax.f32 %v636_v5, 0.0 }
 0x120   : > { %v1701_v2 = vpop.f32.mrf.mxu0 }
 0x121   : > { %v639_v4 = vadd.f32 %v1701_v2, %v2129_v30  ;;  %1742 = vmatprep.mubr.bf16.mxu1 %v686_v0  ;;  %v670_v9 = vmax.f32 %v628_v3, 0.0 }
 0x122   : > { %v630_v6 = vpop.f32.mrf.mxu0  ;;  %1743 = vmatmul.mubr.bf16.gmra.mxu1 %v687_v1 }
 0x123   : > { %v631_v7 = vadd.f32 %v2129_v30, %v630_v6  ;;  %v673_v8 = vmax.f32 %v639_v4, 0.0 }
 0x125   : > { %v671_v10 = vmax.f32 %v631_v7, 0.0  ;;  %v689_v13 = vpack.c.bf16 %v673_v8, %v672_v11 }
 0x127   : > { %v688_v12 = vpack.c.bf16 %v671_v10, %v670_v9 }
 0x129   : > { %1746 = vmatprep.mubr.bf16.mxu1 %v688_v12 }
 0x12a   : > { %1747 = vmatmul.mubr.bf16.gmra.mxu1 %v689_v13 }
 0x1b2   : > { %v1720_v15 = vpop.f32.mrf.mxu0 }
 0x1b3   : > { %v2169_v16 = vadd.f32 %v1720_v15, %v2166_v14 }
 0x1b4   : > { %v795_v17 = vpop.f32.mrf.mxu0 }
 0x1b5   : > { %v2172_v30 = vadd.f32 %v2166_v14, %v795_v17  ;;  %926 = vadd.xlane.f32.xlu1 %v2169_v16 }
 0x1b6   : > { %v1721_v18 = vpop.f32.mrf.mxu0 }
 0x1b7   : > { %v2176_v19 = vadd.f32 %v1721_v18, %v2166_v14  ;;  %922 = vadd.xlane.f32.xlu0 %v2172_v30 }
 0x1b8   : > { %v798_v20 = vpop.f32.mrf.mxu0 }
 0x1b9   : > { %v2180_v21 = vadd.f32 %v2166_v14, %v798_v20  ;;  %928 = vadd.xlane.f32.xlu1 %v2176_v19 }
 0x1ba   : > { %v1724_v22 = vpop.f32.mrf.mxu1 }
 0x1bb   : > { %924 = vadd.xlane.f32.xlu0 %v2180_v21  ;;  %v2185_v24 = vadd.f32 %v1724_v22, %v2166_v14 }
 0x1bc   : > { %v811_v23 = vpop.f32.mrf.mxu1 }
 0x1bd   : > { %v2192_v28 = vadd.f32 %v2166_v14, %v811_v23 }
 0x1be   : > { %v1725_v25 = vpop.f32.mrf.mxu1 }
 0x1bf   : > { %v2188_v26 = vadd.f32 %v1725_v25, %v2166_v14  ;;  %934 = vadd.xlane.f32.xlu0 %v2185_v24 }
 0x1c0   : > { %v814_v27 = vpop.f32.mrf.mxu1 }
 0x1c1   : > { %936 = vadd.xlane.f32.xlu1 %v2188_v26  ;;  %v2196_v31 = vadd.f32 %v2166_v14, %v814_v27 }
 0x1c2   : > { %v1728_v29 = vpop.f32.mrf.mxu1 }
 0x1c3   : > { %930 = vadd.xlane.f32.xlu0 %v2192_v28  ;;  %v2200_v33 = vadd.f32 %v1728_v29, %v2166_v14 }
 0x1c4   : > { %v827_v32 = vpop.f32.mrf.mxu1 }
 0x1c5   : > { %932 = vadd.xlane.f32.xlu1 %v2196_v31  ;;  %v2208_v37 = vadd.f32 %v2166_v14, %v827_v32 }
 0x1c6   : > { %v1729_v34 = vpop.f32.mrf.mxu1 }
 0x1c7   : > { %v2204_v35 = vadd.f32 %v1729_v34, %v2166_v14  ;;  %942 = vadd.xlane.f32.xlu0 %v2200_v33 }
 0x1c8   : > { %v830_v36 = vpop.f32.mrf.mxu1 }
 0x1c9   : > { %944 = vadd.xlane.f32.xlu1 %v2204_v35  ;;  %v2212_v39 = vadd.f32 %v2166_v14, %v830_v36 }
 0x1ca   : > { %v1732_v38 = vpop.f32.mrf.mxu1 }
 0x1cb   : > { %938 = vadd.xlane.f32.xlu0 %v2208_v37  ;;  %v2216_v41 = vadd.f32 %v1732_v38, %v2166_v14 }
 0x1cc   : > { %v843_v40 = vpop.f32.mrf.mxu1 }
 0x1cd   : > { %940 = vadd.xlane.f32.xlu1 %v2212_v39  ;;  %v2224_v45 = vadd.f32 %v2166_v14, %v843_v40 }
 0x1ce   : > { %v1733_v42 = vpop.f32.mrf.mxu1 }
 0x1cf   : > { %v2220_v43 = vadd.f32 %v1733_v42, %v2166_v14  ;;  %950 = vadd.xlane.f32.xlu0 %v2216_v41 }
 0x1d0   : > { %v846_v44 = vpop.f32.mrf.mxu1 }
 0x1d1   : > { %952 = vadd.xlane.f32.xlu1 %v2220_v43  ;;  %v2228_v47 = vadd.f32 %v2166_v14, %v846_v44 }
 0x1d2   : > { %v1736_v46 = vpop.f32.mrf.mxu1 }
 0x1d3   : > { %946 = vadd.xlane.f32.xlu0 %v2224_v45  ;;  %v2232_v49 = vadd.f32 %v1736_v46, %v2166_v14 }
 0x1d4   : > { %v859_v48 = vpop.f32.mrf.mxu1 }
 0x1d5   : > { %948 = vadd.xlane.f32.xlu1 %v2228_v47  ;;  %v2240_v53 = vadd.f32 %v2166_v14, %v859_v48 }
 0x1d6   : > { %v1737_v50 = vpop.f32.mrf.mxu1 }
 0x1d7   : > { %v2236_v51 = vadd.f32 %v1737_v50, %v2166_v14  ;;  %958 = vadd.xlane.f32.xlu0 %v2232_v49 }
 0x1d8   : > { %v862_v52 = vpop.f32.mrf.mxu1 }
 0x1d9   : > { %960 = vadd.xlane.f32.xlu1 %v2236_v51  ;;  %v2244_v55 = vadd.f32 %v2166_v14, %v862_v52 }
 0x1da   : > { %v1740_v54 = vpop.f32.mrf.mxu1 }
 0x1db   : > { %954 = vadd.xlane.f32.xlu0 %v2240_v53  ;;  %v2248_v57 = vadd.f32 %v1740_v54, %v2166_v14 }
 0x1dc   : > { %v875_v56 = vpop.f32.mrf.mxu1 }
 0x1dd   : > { %956 = vadd.xlane.f32.xlu1 %v2244_v55  ;;  %v2256_v61 = vadd.f32 %v2166_v14, %v875_v56 }
 0x1de   : > { %v1741_v58 = vpop.f32.mrf.mxu1 }
 0x1df   : > { %v2252_v59 = vadd.f32 %v1741_v58, %v2166_v14  ;;  %966 = vadd.xlane.f32.xlu0 %v2248_v57 }
 0x1e0   : > { %v878_v60 = vpop.f32.mrf.mxu1 }
 0x1e1   : > { %968 = vadd.xlane.f32.xlu1 %v2252_v59  ;;  %v2260_v63 = vadd.f32 %v2166_v14, %v878_v60 }
 0x1e2   : > { %v1744_v62 = vpop.f32.mrf.mxu1 }
 0x1e3   : > { %962 = vadd.xlane.f32.xlu0 %v2256_v61  ;;  %v2264_v1 = vadd.f32 %v1744_v62, %v2166_v14 }
 0x1e4   : > { %v891_v0 = vpop.f32.mrf.mxu1 }
 0x1e5   : > { %964 = vadd.xlane.f32.xlu1 %v2260_v63  ;;  %v2272_v5 = vadd.f32 %v2166_v14, %v891_v0 }
 0x1e6   : > { %v1745_v2 = vpop.f32.mrf.mxu1 }
 0x1e7   : > { %v2268_v3 = vadd.f32 %v1745_v2, %v2166_v14  ;;  %974 = vadd.xlane.f32.xlu0 %v2264_v1 }
 0x1e8   : > { %v894_v4 = vpop.f32.mrf.mxu1 }
 0x1e9   : > { %976 = vadd.xlane.f32.xlu1 %v2268_v3  ;;  %v2276_v7 = vadd.f32 %v2166_v14, %v894_v4 }
 0x1ea   : > { %v1748_v6 = vpop.f32.mrf.mxu1 }
 0x1eb   : > { %970 = vadd.xlane.f32.xlu0 %v2272_v5  ;;  %v2285_v12 = vadd.f32 %v1748_v6, %v2166_v14 }
 0x1ec   : > { %v907_v8 = vpop.f32.mrf.mxu1 }
 0x1ed   : > { %v2280_v9 = vadd.f32 %v2166_v14, %v907_v8  ;;  %972 = vadd.xlane.f32.xlu1 %v2276_v7 }
 0x1ee   : > { %v1749_v10 = vpop.f32.mrf.mxu1 }
 0x1ef   : > { %978 = vadd.xlane.f32.xlu0 %v2280_v9  ;;  %v2293_v15 = vadd.f32 %v1749_v10, %v2166_v14 }
 0x1f0   : > { %v910_v11 = vpop.f32.mrf.mxu1 }
 0x1f1   : > { %v2288_v13 = vadd.f32 %v2166_v14, %v910_v11 }
 0x1f3   : > { %980 = vadd.xlane.f32.xlu1 %v2288_v13  ;;  %982 = vadd.xlane.f32.xlu0 %v2285_v12 }
 0x1f7   : > { %984 = vadd.xlane.f32.xlu1 %v2293_v15 }
 0x23e   : > { %v927_v17 = vpop.xlane.xlu1 %926 }
 0x23f   : > { %v989_v18 = vmul.f32 0.0078125, %v927_v17 }
 0x240   : > { %v923_v20 = vpop.xlane.xlu0 %922 }
 0x241   : > { %v2297_v22 = vsub.f32 %v2169_v16, %v989_v18  ;;  %v987_v23 = vmul.f32 0.0078125, %v923_v20 }
 0x242   : > { %v929_v25 = vpop.xlane.xlu1 %928 }
 0x243   : > { %v2300_v27 = vsub.f32 %v2172_v30, %v987_v23  ;;  %v990_v29 = vmul.f32 0.0078125, %v929_v25  ;;  %v1053_v32 = vmul.f32 %v2297_v22, %v2297_v22 }
 0x244   : > { %v925_v34 = vpop.xlane.xlu0 %924 }
 0x245   : > { %v2305_v14 = vsub.f32 %v2176_v19, %v990_v29  ;;  %v988_v36 = vmul.f32 0.0078125, %v925_v34  ;;  %1087 = vadd.xlane.f32.xlu0 %v1053_v32  ;;  %v1051_v30 = vmul.f32 %v2300_v27, %v2300_v27 }
 0x247   : > { %v2308_v38 = vsub.f32 %v2180_v21, %v988_v36  ;;  %v1054_v16 = vmul.f32 %v2305_v14, %v2305_v14 }
 0x248   : > { %v935_v40 = vpop.xlane.xlu0 %934 }
 0x249   : > { %v993_v42 = vmul.f32 0.0078125, %v935_v40  ;;  %1089 = vadd.xlane.f32.xlu1 %v1054_v16  ;;  %1083 = vadd.xlane.f32.xlu0 %v1051_v30  ;;  %v1052_v48 = vmul.f32 %v2308_v38, %v2308_v38 }
 0x24a   : > { %v937_v44 = vpop.xlane.xlu1 %936 }
 0x24b   : > { %v2315_v46 = vsub.f32 %v2185_v24, %v993_v42  ;;  %v994_v19 = vmul.f32 0.0078125, %v937_v44 }
 0x24c   : > { %v931_v21 = vpop.xlane.xlu0 %930 }
 0x24d   : > { %v2320_v50 = vsub.f32 %v2188_v26, %v994_v19  ;;  %v991_v52 = vmul.f32 0.0078125, %v931_v21  ;;  %1085 = vadd.xlane.f32.xlu1 %v1052_v48  ;;  %v1057_v54 = vmul.f32 %v2315_v46, %v2315_v46 }
 0x24e   : > { %v933_v56 = vpop.xlane.xlu1 %932 }
 0x24f   : > { %v2325_v58 = vsub.f32 %v2192_v28, %v991_v52  ;;  %v992_v60 = vmul.f32 0.0078125, %v933_v56  ;;  %1095 = vadd.xlane.f32.xlu0 %v1057_v54  ;;  %v1058_v24 = vmul.f32 %v2320_v50, %v2320_v50 }
 0x250   : > { %v943_v62 = vpop.xlane.xlu0 %942 }
 0x251   : > { %v2330_v0 = vsub.f32 %v2196_v31, %v992_v60  ;;  %v997_v26 = vmul.f32 0.0078125, %v943_v62  ;;  %1097 = vadd.xlane.f32.xlu1 %v1058_v24  ;;  %v1055_v2 = vmul.f32 %v2325_v58, %v2325_v58 }
 0x252   : > { %v945_v4 = vpop.xlane.xlu1 %944 }
 0x253   : > { %v2335_v6 = vsub.f32 %v2200_v33, %v997_v26  ;;  %v998_v28 = vmul.f32 0.0078125, %v945_v4  ;;  %1091 = vadd.xlane.f32.xlu0 %v1055_v2  ;;  %v1056_v8 = vmul.f32 %v2330_v0, %v2330_v0 }
 0x254   : > { %v939_v10 = vpop.xlane.xlu0 %938 }
 0x255   : > { %v2340_v11 = vsub.f32 %v2204_v35, %v998_v28  ;;  %v995_v31 = vmul.f32 0.0078125, %v939_v10  ;;  %1093 = vadd.xlane.f32.xlu1 %v1056_v8  ;;  %v1061_v17 = vmul.f32 %v2335_v6, %v2335_v6 }
 0x256   : > { %v941_v18 = vpop.xlane.xlu1 %940 }
 0x257   : > { %v2345_v20 = vsub.f32 %v2208_v37, %v995_v31  ;;  %v996_v33 = vmul.f32 0.0078125, %v941_v18  ;;  %1103 = vadd.xlane.f32.xlu0 %v1061_v17  ;;  %v1062_v23 = vmul.f32 %v2340_v11, %v2340_v11 }
 0x258   : > { %v951_v25 = vpop.xlane.xlu0 %950 }
 0x259   : > { %v2350_v29 = vsub.f32 %v2212_v39, %v996_v33  ;;  %v1001_v35 = vmul.f32 0.0078125, %v951_v25  ;;  %1105 = vadd.xlane.f32.xlu1 %v1062_v23  ;;  %v1059_v32 = vmul.f32 %v2345_v20, %v2345_v20 }
 0x25a   : > { %v953_v34 = vpop.xlane.xlu1 %952 }
 0x25b   : > { %v2355_v36 = vsub.f32 %v2216_v41, %v1001_v35  ;;  %v1002_v37 = vmul.f32 0.0078125, %v953_v34  ;;  %1099 = vadd.xlane.f32.xlu0 %v1059_v32  ;;  %v1060_v16 = vmul.f32 %v2350_v29, %v2350_v29 }
 0x25c   : > { %v947_v30 = vpop.xlane.xlu0 %946 }
 0x25d   : > { %v2360_v40 = vsub.f32 %v2220_v43, %v1002_v37  ;;  %v999_v39 = vmul.f32 0.0078125, %v947_v30  ;;  %1101 = vadd.xlane.f32.xlu1 %v1060_v16  ;;  %v1065_v42 = vmul.f32 %v2355_v36, %v2355_v36 }
 0x25e   : > { %v949_v44 = vpop.xlane.xlu1 %948 }
 0x25f   : > { %v2365_v19 = vsub.f32 %v2224_v45, %v999_v39  ;;  %v1000_v41 = vmul.f32 0.0078125, %v949_v44  ;;  %1111 = vadd.xlane.f32.xlu0 %v1065_v42  ;;  %v1066_v48 = vmul.f32 %v2360_v40, %v2360_v40 }
 0x260   : > { %v959_v21 = vpop.xlane.xlu0 %958 }
 0x261   : > { %v2370_v52 = vsub.f32 %v2228_v47, %v1000_v41  ;;  %v1005_v43 = vmul.f32 0.0078125, %v959_v21  ;;  %1113 = vadd.xlane.f32.xlu1 %v1066_v48  ;;  %v1063_v54 = vmul.f32 %v2365_v19, %v2365_v19 }
 0x262   : > { %v961_v56 = vpop.xlane.xlu1 %960 }
 0x263   : > { %v2375_v60 = vsub.f32 %v2232_v49, %v1005_v43  ;;  %v1006_v45 = vmul.f32 0.0078125, %v961_v56  ;;  %1107 = vadd.xlane.f32.xlu0 %v1063_v54  ;;  %v1064_v24 = vmul.f32 %v2370_v52, %v2370_v52 }
 0x264   : > { %v955_v62 = vpop.xlane.xlu0 %954 }
 0x265   : > { %v2380_v26 = vsub.f32 %v2236_v51, %v1006_v45  ;;  %v1003_v47 = vmul.f32 0.0078125, %v955_v62  ;;  %1109 = vadd.xlane.f32.xlu1 %v1064_v24  ;;  %v1069_v2 = vmul.f32 %v2375_v60, %v2375_v60 }
 0x266   : > { %v957_v4 = vpop.xlane.xlu1 %956 }
 0x267   : > { %v2385_v28 = vsub.f32 %v2240_v53, %v1003_v47  ;;  %v1004_v49 = vmul.f32 0.0078125, %v957_v4  ;;  %1119 = vadd.xlane.f32.xlu0 %v1069_v2  ;;  %v1070_v8 = vmul.f32 %v2380_v26, %v2380_v26 }
 0x268   : > { %v967_v10 = vpop.xlane.xlu0 %966 }
 0x269   : > { %v2390_v31 = vsub.f32 %v2244_v55, %v1004_v49  ;;  %v1009_v51 = vmul.f32 0.0078125, %v967_v10  ;;  %1121 = vadd.xlane.f32.xlu1 %v1070_v8  ;;  %v1067_v17 = vmul.f32 %v2385_v28, %v2385_v28 }
 0x26a   : > { %v969_v18 = vpop.xlane.xlu1 %968 }
 0x26b   : > { %v2395_v33 = vsub.f32 %v2248_v57, %v1009_v51  ;;  %v1010_v53 = vmul.f32 0.0078125, %v969_v18  ;;  %1115 = vadd.xlane.f32.xlu0 %v1067_v17  ;;  %v1068_v23 = vmul.f32 %v2390_v31, %v2390_v31 }
 0x26c   : > { %v963_v25 = vpop.xlane.xlu0 %962 }
 0x26d   : > { %v2400_v35 = vsub.f32 %v2252_v59, %v1010_v53  ;;  %v1007_v55 = vmul.f32 0.0078125, %v963_v25  ;;  %1117 = vadd.xlane.f32.xlu1 %v1068_v23  ;;  %v1073_v32 = vmul.f32 %v2395_v33, %v2395_v33 }
 0x26e   : > { %v965_v34 = vpop.xlane.xlu1 %964 }
 0x26f   : > { %v2405_v37 = vsub.f32 %v2256_v61, %v1007_v55  ;;  %v1008_v57 = vmul.f32 0.0078125, %v965_v34  ;;  %1127 = vadd.xlane.f32.xlu0 %v1073_v32  ;;  %v1074_v16 = vmul.f32 %v2400_v35, %v2400_v35 }
 0x270   : > { %v975_v30 = vpop.xlane.xlu0 %974 }
 0x271   : > { %v2410_v39 = vsub.f32 %v2260_v63, %v1008_v57  ;;  %v1013_v59 = vmul.f32 0.0078125, %v975_v30  ;;  %1129 = vadd.xlane.f32.xlu1 %v1074_v16  ;;  %v1071_v42 = vmul.f32 %v2405_v37, %v2405_v37 }
 0x272   : > { %v977_v44 = vpop.xlane.xlu1 %976 }
 0x273   : > { %v2415_v41 = vsub.f32 %v2264_v1, %v1013_v59  ;;  %v1014_v61 = vmul.f32 0.0078125, %v977_v44  ;;  %1123 = vadd.xlane.f32.xlu0 %v1071_v42  ;;  %v1072_v48 = vmul.f32 %v2410_v39, %v2410_v39 }
 0x274   : > { %v971_v21 = vpop.xlane.xlu0 %970 }
 0x275   : > { %v2420_v43 = vsub.f32 %v2268_v3, %v1014_v61  ;;  %v1011_v63 = vmul.f32 0.0078125, %v971_v21  ;;  %1125 = vadd.xlane.f32.xlu1 %v1072_v48  ;;  %v1077_v54 = vmul.f32 %v2415_v41, %v2415_v41 }
 0x276   : > { %v973_v56 = vpop.xlane.xlu1 %972 }
 0x277   : > { %v2425_v45 = vsub.f32 %v2272_v5, %v1011_v63  ;;  %v1012_v1 = vmul.f32 0.0078125, %v973_v56  ;;  %1135 = vadd.xlane.f32.xlu0 %v1077_v54  ;;  %v1078_v24 = vmul.f32 %v2420_v43, %v2420_v43 }
 0x278   : > { %v979_v62 = vpop.xlane.xlu0 %978 }
 0x279   : > { %v2430_v47 = vsub.f32 %v2276_v7, %v1012_v1  ;;  %v1015_v3 = vmul.f32 0.0078125, %v979_v62  ;;  %1137 = vadd.xlane.f32.xlu1 %v1078_v24  ;;  %v1075_v2 = vmul.f32 %v2425_v45, %v2425_v45 }
 0x27b   : > { %v2435_v4 = vsub.f32 %v2280_v9, %v1015_v3  ;;  %1131 = vadd.xlane.f32.xlu0 %v1075_v2  ;;  %v1076_v5 = vmul.f32 %v2430_v47, %v2430_v47 }
 0x27c   : > { %v981_v49 = vpop.xlane.xlu1 %980  ;;  %v983_v8 = vpop.xlane.xlu0 %982 }
 0x27d   : > { %v1016_v10 = vmul.f32 0.0078125, %v981_v49  ;;  %v1017_v51 = vmul.f32 0.0078125, %v983_v8  ;;  %1133 = vadd.xlane.f32.xlu1 %v1076_v5  ;;  %v1079_v7 = vmul.f32 %v2435_v4, %v2435_v4 }
 0x27f   : > { %v2442_v17 = vsub.f32 %v2288_v13, %v1016_v10  ;;  %v2445_v18 = vsub.f32 %v2285_v12, %v1017_v51  ;;  %1139 = vadd.xlane.f32.xlu0 %v1079_v7  ;;  %v2459_v10 = vld [vmem:[%s2655_s5] ss:$0 sm:$0xff] }
 0x280   : > { %v985_v9 = vpop.xlane.xlu1 %984 }
 0x281   : > { %v1018_v53 = vmul.f32 0.0078125, %v985_v9  ;;  %v1080_v23 = vmul.f32 %v2442_v17, %v2442_v17  ;;  %v1081_v25 = vmul.f32 %v2445_v18, %v2445_v18 }
 0x283   : > { %v2452_v55 = vsub.f32 %v2293_v15, %v1018_v53  ;;  %1141 = vadd.xlane.f32.xlu1 %v1080_v23  ;;  %1143 = vadd.xlane.f32.xlu0 %v1081_v25  ;;  %v2466_v23 = vld [vmem:[%s2656_s6] ss:$0 sm:$0xff] }
 0x285   : > { %v1082_v13 = vmul.f32 %v2452_v55, %v2452_v55 }
 0x287   : > { %1145 = vadd.xlane.f32.xlu1 %v1082_v13 }
 0x2ce   : > { %v1088_v12 = vpop.xlane.xlu0 %1087 }
 0x2cf   : > { %v1149_v32 = vmul.f32 0.0078125, %v1088_v12 }
 0x2d1   : > { %v1181_v34 = vadd.f32 1e-05, %v1149_v32 }
 0x2d2   : > { %v1090_v57 = vpop.xlane.xlu1 %1089  ;;  %v1084_v16 = vpop.xlane.xlu0 %1083 }
 0x2d3   : > { %1835 = vrsqrt.f32 %v1181_v34  ;;  %v1150_v30 = vmul.f32 0.0078125, %v1090_v57  ;;  %v1147_v59 = vmul.f32 0.0078125, %v1084_v16 }
 0x2d5   : > { %v1182_v42 = vadd.f32 1e-05, %v1150_v30  ;;  %v1179_v44 = vadd.f32 1e-05, %v1147_v59 }
 0x2d6   : > { %v1086_v61 = vpop.xlane.xlu1 %1085 }
 0x2d7   : > { %1837 = vrsqrt.f32 %v1182_v42  ;;  %v1148_v15 = vmul.f32 0.0078125, %v1086_v61 }
 0x2d8   : > { %1839 = vrsqrt.f32 %v1179_v44  ;;  %v1096_v48 = vpop.xlane.xlu0 %1095 }
 0x2d9   : > { %v1180_v21 = vadd.f32 1e-05, %v1148_v15  ;;  %v1153_v63 = vmul.f32 0.0078125, %v1096_v48 }
 0x2da   : > { %v1098_v54 = vpop.xlane.xlu1 %1097 }
 0x2db   : > { %1841 = vrsqrt.f32 %v1180_v21  ;;  %v1185_v56 = vadd.f32 1e-05, %v1153_v63  ;;  %v1154_v1 = vmul.f32 0.0078125, %v1098_v54 }
 0x2dc   : > { %v1092_v24 = vpop.xlane.xlu0 %1091 }
 0x2dd   : > { %1843 = vrsqrt.f32 %v1185_v56  ;;  %v1186_v62 = vadd.f32 1e-05, %v1154_v1  ;;  %v1151_v3 = vmul.f32 0.0078125, %v1092_v24 }
 0x2de   : > { %v1094_v2 = vpop.xlane.xlu1 %1093 }
 0x2df   : > { %1845 = vrsqrt.f32 %v1186_v62  ;;  %v1183_v5 = vadd.f32 1e-05, %v1151_v3  ;;  %v1152_v49 = vmul.f32 0.0078125, %v1094_v2 }
 0x2e0   : > { %v1836_v8 = vpop.eup %1835  ;;  %v1104_v51 = vpop.xlane.xlu0 %1103 }
 0x2e1   : > { %v1245_v7 = vmul.f32 %v1836_v8, %v2297_v22  ;;  %1847 = vrsqrt.f32 %v1183_v5  ;;  %v1184_v9 = vadd.f32 1e-05, %v1152_v49  ;;  %v1157_v53 = vmul.f32 0.0078125, %v1104_v51 }
 0x2e2   : > { %v1106_v25 = vpop.xlane.xlu1 %1105 }
 0x2e3   : > { %v1284_v13 = vmul.f32 %v2459_v10, %v1245_v7  ;;  %1849 = vrsqrt.f32 %v1184_v9  ;;  %v1189_v12 = vadd.f32 1e-05, %v1157_v53  ;;  %v1158_v32 = vmul.f32 0.0078125, %v1106_v25 }
 0x2e4   : > { %v1838_v34 = vpop.eup %1837  ;;  %v1100_v57 = vpop.xlane.xlu0 %1099 }
 0x2e5   : > { %v1840_v16 = vpop.eup %1839  ;;  %v1323_v22 = vadd.f32 %v2466_v23, %v1284_v13  ;;  %v1246_v30 = vmul.f32 %v1838_v34, %v2305_v14  ;;  %1851 = vrsqrt.f32 %v1189_v12  ;;  %v1190_v59 = vadd.f32 1e-05, %v1158_v32 }
 0x2e6   : > { %v1243_v42 = vmul.f32 %v1840_v16, %v2300_v27  ;;  %v1155_v44 = vmul.f32 0.0078125, %v1100_v57  ;;  %v1102_v61 = vpop.xlane.xlu1 %1101 }
 0x2e7   : > { %vm1355_vm1 = vcmp.ge.f32.partialorder %v1323_v22, 0.0  ;;  %v1387_v15 = vmul.f32 0.01, %v1323_v22  ;;  %v1285_v48 = vmul.f32 %v2459_v10, %v1246_v30  ;;  %1853 = vrsqrt.f32 %v1190_v59 }
 0x2e8   : > { %v1842_v21 = vpop.eup %1841  ;;  %v1282_v63 = vmul.f32 %v2459_v10, %v1243_v42  ;;  %v1187_v54 = vadd.f32 1e-05, %v1155_v44  ;;  %v1156_v56 = vmul.f32 0.0078125, %v1102_v61  ;;  %v1112_v1 = vpop.xlane.xlu0 %1111 }
 0x2e9   : > { %v1419_v24 = vsel %vm1355_vm1, %v1323_v22, %v1387_v15  ;;  %v1324_v14 = vadd.f32 %v2466_v23, %v1285_v48  ;;  %v1244_v62 = vmul.f32 %v1842_v21, %v2308_v38  ;;  %v1161_v3 = vmul.f32 0.0078125, %v1112_v1 }
 0x2ea   : > { %v1844_v27 = vpop.eup %1843  ;;  %1451 = vst [vmem:[%s2478_s29 + $0x10] sm:$0xff] %v1419_v24  ;;  %v1321_v2 = vadd.f32 %v2466_v23, %v1282_v63  ;;  %1855 = vrsqrt.f32 %v1187_v54  ;;  %v1188_v5 = vadd.f32 1e-05, %v1156_v56  ;;  %v1114_v49 = vpop.xlane.xlu1 %1113 }
 0x2eb   : > { %vm1356_vm2 = vcmp.ge.f32.partialorder %v1324_v14, 0.0  ;;  %v1388_v8 = vmul.f32 0.01, %v1324_v14  ;;  %v1283_v51 = vmul.f32 %v2459_v10, %v1244_v62  ;;  %v1249_v7 = vmul.f32 %v1844_v27, %v2315_v46 }
 0x2ec   : > { %v1846_v9 = vpop.eup %1845  ;;  %vm1353_vm3 = vcmp.ge.f32.partialorder %v1321_v2, 0.0  ;;  %v1385_v38 = vmul.f32 0.01, %v1321_v2  ;;  %1857 = vrsqrt.f32 %v1188_v5  ;;  %v1193_v53 = vadd.f32 1e-05, %v1161_v3  ;;  %v1108_v25 = vpop.xlane.xlu0 %1107 }
 0x2ed   : > { %v1420_v13 = vsel %vm1356_vm2, %v1324_v14, %v1388_v8  ;;  %v1322_v12 = vadd.f32 %v2466_v23, %v1283_v51  ;;  %v1288_v32 = vmul.f32 %v2459_v10, %v1249_v7  ;;  %v1250_v34 = vmul.f32 %v1846_v9, %v2320_v50 }
 0x2ee   : > { %v1848_v57 = vpop.eup %1847  ;;  %1452 = vst [vmem:[%s2478_s29 + $0x18] sm:$0xff] %v1420_v13  ;;  %v1417_v16 = vsel %vm1353_vm3, %v1321_v2, %v1385_v38  ;;  %1859 = vrsqrt.f32 %v1193_v53  ;;  %v1162_v22 = vmul.f32 0.0078125, %v1114_v49  ;;  %v1159_v46 = vmul.f32 0.0078125, %v1108_v25  ;;  %v1110_v30 = vpop.xlane.xlu1 %1109 }
 0x2ef   : > { %1449 = vst [vmem:[%s2478_s29] sm:$0xff] %v1417_v16  ;;  %vm1354_vm4 = vcmp.ge.f32.partialorder %v1322_v12, 0.0  ;;  %v1386_v59 = vmul.f32 0.01, %v1322_v12  ;;  %v1327_v42 = vadd.f32 %v2466_v23, %v1288_v32  ;;  %v1289_v44 = vmul.f32 %v2459_v10, %v1250_v34 }
 0x2f0   : > { %v1850_v61 = vpop.eup %1849  ;;  %v1247_v15 = vmul.f32 %v1848_v57, %v2325_v58  ;;  %v1194_v48 = vadd.f32 1e-05, %v1162_v22  ;;  %v1191_v50 = vadd.f32 1e-05, %v1159_v46  ;;  %v1160_v21 = vmul.f32 0.0078125, %v1110_v30  ;;  %v1120_v63 = vpop.xlane.xlu0 %1119 }
 0x2f1   : > { %v1418_v54 = vsel %vm1354_vm4, %v1322_v12, %v1386_v59  ;;  %vm1359_vm5 = vcmp.ge.f32.partialorder %v1327_v42, 0.0  ;;  %v1391_v56 = vmul.f32 0.01, %v1327_v42  ;;  %v1328_v1 = vadd.f32 %v2466_v23, %v1289_v44 }
 0x2f2   : > { %v1852_v24 = vpop.eup %1851  ;;  %1450 = vst [vmem:[%s2478_s29 + $0x8] sm:$0xff] %v1418_v54  ;;  %v1286_v14 = vmul.f32 %v2459_v10, %v1247_v15  ;;  %v1248_v62 = vmul.f32 %v1850_v61, %v2330_v0  ;;  %1861 = vrsqrt.f32 %v1194_v48  ;;  %v1192_v3 = vadd.f32 1e-05, %v1160_v21  ;;  %v1122_v27 = vpop.xlane.xlu1 %1121 }
 0x2f3   : > { %v1423_v58 = vsel %vm1359_vm5, %v1327_v42, %v1391_v56  ;;  %vm1360_vm6 = vcmp.ge.f32.partialorder %v1328_v1, 0.0  ;;  %v1392_v2 = vmul.f32 0.01, %v1328_v1  ;;  %v1253_v5 = vmul.f32 %v1852_v24, %v2335_v6 }
 0x2f4   : > { %v1854_v49 = vpop.eup %1853  ;;  %1455 = vst [vmem:[%s2478_s29 + $0x30] sm:$0xff] %v1423_v58  ;;  %v1325_v8 = vadd.f32 %v2466_v23, %v1286_v14  ;;  %v1287_v51 = vmul.f32 %v2459_v10, %v1248_v62  ;;  %1863 = vrsqrt.f32 %v1191_v50  ;;  %v1165_v7 = vmul.f32 0.0078125, %v1120_v63  ;;  %v1116_v9 = vpop.xlane.xlu0 %1115 }
 0x2f5   : > { %v1424_v38 = vsel %vm1360_vm6, %v1328_v1, %v1392_v2  ;;  %v1292_v0 = vmul.f32 %v2459_v10, %v1253_v5  ;;  %v1254_v53 = vmul.f32 %v1854_v49, %v2340_v11  ;;  %1865 = vrsqrt.f32 %v1192_v3 }
 0x2f6   : > { %1456 = vst [vmem:[%s2478_s29 + $0x38] sm:$0xff] %v1424_v38  ;;  %vm1357_vm7 = vcmp.ge.f32.partialorder %v1325_v8, 0.0  ;;  %v1389_v25 = vmul.f32 0.01, %v1325_v8  ;;  %v1326_v6 = vadd.f32 %v2466_v23, %v1287_v51  ;;  %v1197_v13 = vadd.f32 1e-05, %v1165_v7  ;;  %v1118_v12 = vpop.xlane.xlu1 %1117 }
 0x2f7   : > { %v1856_v32 = vpop.eup %1855  ;;  %v1331_v34 = vadd.f32 %v2466_v23, %v1292_v0  ;;  %v1293_v57 = vmul.f32 %v2459_v10, %v1254_v53  ;;  %v1166_v16 = vmul.f32 0.0078125, %v1122_v27  ;;  %v1163_v22 = vmul.f32 0.0078125, %v1116_v9 }
 0x2f8   : > { %v1421_v46 = vsel %vm1357_vm7, %v1325_v8, %v1389_v25  ;;  %vm1358_vm8 = vcmp.ge.f32.partialorder %v1326_v6, 0.0  ;;  %v1390_v11 = vmul.f32 0.01, %v1326_v6  ;;  %v1251_v30 = vmul.f32 %v1856_v32, %v2345_v20  ;;  %v1128_v59 = vpop.xlane.xlu0 %1127 }
 0x2f9   : > { %v1858_v42 = vpop.eup %1857  ;;  %1453 = vst [vmem:[%s2478_s29 + $0x20] sm:$0xff] %v1421_v46  ;;  %vm1363_vm9 = vcmp.ge.f32.partialorder %v1331_v34, 0.0  ;;  %v1395_v44 = vmul.f32 0.01, %v1331_v34  ;;  %v1332_v61 = vadd.f32 %v2466_v23, %v1293_v57  ;;  %1867 = vrsqrt.f32 %v1197_v13 }
 0x2fa   : > { %v1422_v15 = vsel %vm1358_vm8, %v1326_v6, %v1390_v11  ;;  %v1290_v48 = vmul.f32 %v2459_v10, %v1251_v30  ;;  %v1252_v50 = vmul.f32 %v1858_v42, %v2350_v29  ;;  %v1198_v21 = vadd.f32 1e-05, %v1166_v16  ;;  %v1130_v63 = vpop.xlane.xlu1 %1129 }
 0x2fb   : > { %v1860_v54 = vpop.eup %1859  ;;  %1454 = vst [vmem:[%s2478_s29 + $0x28] sm:$0xff] %v1422_v15  ;;  %v1427_v20 = vsel %vm1363_vm9, %v1331_v34, %v1395_v44  ;;  %vm1364_vm10 = vcmp.ge.f32.partialorder %v1332_v61, 0.0  ;;  %v1396_v56 = vmul.f32 0.01, %v1332_v61  ;;  %v1195_v1 = vadd.f32 1e-05, %v1163_v22 }
 0x2fc   : > { %1459 = vst [vmem:[%s2478_s29 + $0x50] sm:$0xff] %v1427_v20  ;;  %v1329_v24 = vadd.f32 %v2466_v23, %v1290_v48  ;;  %v1291_v14 = vmul.f32 %v2459_v10, %v1252_v50  ;;  %v1257_v62 = vmul.f32 %v1860_v54, %v2355_v36  ;;  %1869 = vrsqrt.f32 %v1198_v21  ;;  %v1124_v3 = vpop.xlane.xlu0 %1123 }
 0x2fd   : > { %v1428_v27 = vsel %vm1364_vm10, %v1332_v61, %v1396_v56  ;;  %1871 = vrsqrt.f32 %v1195_v1  ;;  %v1164_v29 = vmul.f32 0.0078125, %v1118_v12  ;;  %v1169_v58 = vmul.f32 0.0078125, %v1128_v59 }
 0x2fe   : > { %1460 = vst [vmem:[%s2478_s29 + $0x58] sm:$0xff] %v1428_v27  ;;  %vm1361_vm11 = vcmp.ge.f32.partialorder %v1329_v24, 0.0  ;;  %v1393_v2 = vmul.f32 0.01, %v1329_v24  ;;  %v1330_v5 = vadd.f32 %v2466_v23, %v1291_v14  ;;  %v1296_v49 = vmul.f32 %v2459_v10, %v1257_v62  ;;  %v1126_v8 = vpop.xlane.xlu1 %1125 }
 0x2ff   : > { %v1862_v51 = vpop.eup %1861  ;;  %v1196_v7 = vadd.f32 1e-05, %v1164_v29  ;;  %v1201_v9 = vadd.f32 1e-05, %v1169_v58  ;;  %v1170_v38 = vmul.f32 0.0078125, %v1130_v63  ;;  %v1167_v36 = vmul.f32 0.0078125, %v1124_v3 }
 0x300   : > { %v1425_v0 = vsel %vm1361_vm11, %v1329_v24, %v1393_v2  ;;  %vm1362_vm12 = vcmp.ge.f32.partialorder %v1330_v5, 0.0  ;;  %v1394_v53 = vmul.f32 0.01, %v1330_v5  ;;  %v1335_v25 = vadd.f32 %v2466_v23, %v1296_v49  ;;  %v1136_v6 = vpop.xlane.xlu0 %1135 }
 0x301   : > { %v1864_v13 = vpop.eup %1863  ;;  %1457 = vst [vmem:[%s2478_s29 + $0x40] sm:$0xff] %v1425_v0  ;;  %v1258_v12 = vmul.f32 %v1862_v51, %v2360_v40  ;;  %1873 = vrsqrt.f32 %v1196_v7  ;;  %v1202_v32 = vadd.f32 1e-05, %v1170_v38  ;;  %v1199_v34 = vadd.f32 1e-05, %v1167_v36 }
 0x302   : > { %v1866_v57 = vpop.eup %1865  ;;  %v1426_v16 = vsel %vm1362_vm12, %v1330_v5, %v1394_v53  ;;  %vm1367_vm13 = vcmp.ge.f32.partialorder %v1335_v25, 0.0  ;;  %v1399_v22 = vmul.f32 0.01, %v1335_v25  ;;  %v1255_v46 = vmul.f32 %v1864_v13, %v2365_v19  ;;  %v1138_v11 = vpop.xlane.xlu1 %1137 }
 0x303   : > { %1458 = vst [vmem:[%s2478_s29 + $0x48] sm:$0xff] %v1426_v16  ;;  %v1297_v30 = vmul.f32 %v2459_v10, %v1258_v12  ;;  %v1256_v59 = vmul.f32 %v1866_v57, %v2370_v52  ;;  %1875 = vrsqrt.f32 %v1201_v9  ;;  %v1168_v42 = vmul.f32 0.0078125, %v1126_v8 }
 0x304   : > { %v1431_v44 = vsel %vm1367_vm13, %v1335_v25, %v1399_v22  ;;  %v1294_v40 = vmul.f32 %v2459_v10, %v1255_v46  ;;  %1877 = vrsqrt.f32 %v1202_v32  ;;  %v1173_v61 = vmul.f32 0.0078125, %v1136_v6  ;;  %v1132_v15 = vpop.xlane.xlu0 %1131 }
 0x305   : > { %1463 = vst [vmem:[%s2478_s29 + $0x70] sm:$0xff] %v1431_v44  ;;  %v1336_v48 = vadd.f32 %v2466_v23, %v1297_v30  ;;  %v1295_v50 = vmul.f32 %v2459_v10, %v1256_v59  ;;  %1879 = vrsqrt.f32 %v1199_v34  ;;  %v1200_v19 = vadd.f32 1e-05, %v1168_v42 }
 0x306   : > { %v1868_v21 = vpop.eup %1867  ;;  %v1333_v63 = vadd.f32 %v2466_v23, %v1294_v40  ;;  %v1205_v54 = vadd.f32 1e-05, %v1173_v61  ;;  %v1174_v52 = vmul.f32 0.0078125, %v1138_v11  ;;  %v1171_v20 = vmul.f32 0.0078125, %v1132_v15  ;;  %v1134_v3 = vpop.xlane.xlu1 %1133 }
 0x307   : > { %vm1368_vm14 = vcmp.ge.f32.partialorder %v1336_v48, 0.0  ;;  %v1400_v56 = vmul.f32 0.01, %v1336_v48  ;;  %v1334_v1 = vadd.f32 %v2466_v23, %v1295_v50  ;;  %v1261_v24 = vmul.f32 %v1868_v21, %v2375_v60 }
 0x308   : > { %vm1365_vm15 = vcmp.ge.f32.partialorder %v1333_v63, 0.0  ;;  %v1397_v14 = vmul.f32 0.01, %v1333_v63  ;;  %1881 = vrsqrt.f32 %v1200_v19  ;;  %v1206_v62 = vadd.f32 1e-05, %v1174_v52  ;;  %v1140_v27 = vpop.xlane.xlu0 %1139 }
 0x309   : > { %v1870_v29 = vpop.eup %1869  ;;  %v1432_v58 = vsel %vm1368_vm14, %v1336_v48, %v1400_v56  ;;  %vm1366_vm0 = vcmp.ge.f32.partialorder %v1334_v1, 0.0  ;;  %v1398_v2 = vmul.f32 0.01, %v1334_v1  ;;  %v1300_v5 = vmul.f32 %v2459_v10, %v1261_v24 }
 0x30a   : > { %v1872_v49 = vpop.eup %1871  ;;  %1464 = vst [vmem:[%s2478_s29 + $0x78] sm:$0xff] %v1432_v58  ;;  %v1429_v8 = vsel %vm1365_vm15, %v1333_v63, %v1397_v14  ;;  %v1262_v51 = vmul.f32 %v1870_v29, %v2380_v26  ;;  %1883 = vrsqrt.f32 %v1205_v54  ;;  %v1203_v60 = vadd.f32 1e-05, %v1171_v20 }
 0x30b   : > { %1461 = vst [vmem:[%s2478_s29 + $0x60] sm:$0xff] %v1429_v8  ;;  %v1430_v7 = vsel %vm1366_vm0, %v1334_v1, %v1398_v2  ;;  %v1339_v9 = vadd.f32 %v2466_v23, %v1300_v5  ;;  %v1259_v38 = vmul.f32 %v1872_v49, %v2385_v28  ;;  %1885 = vrsqrt.f32 %v1206_v62 }
 0x30c   : > { %1462 = vst [vmem:[%s2478_s29 + $0x68] sm:$0xff] %v1430_v7  ;;  %v1301_v36 = vmul.f32 %v2459_v10, %v1262_v51  ;;  %1887 = vrsqrt.f32 %v1203_v60  ;;  %v1172_v0 = vmul.f32 0.0078125, %v1134_v3  ;;  %v1175_v53 = vmul.f32 0.0078125, %v1140_v27  ;;  %v1142_v25 = vpop.xlane.xlu1 %1141  ;;  %v1144_v6 = vpop.xlane.xlu0 %1143 }
 0x30d   : > { %vm1371_vm1 = vcmp.ge.f32.partialorder %v1339_v9, 0.0  ;;  %v1403_v26 = vmul.f32 0.01, %v1339_v9  ;;  %v1298_v13 = vmul.f32 %v2459_v10, %v1259_v38  ;;  %v1176_v12 = vmul.f32 0.0078125, %v1142_v25 }
 0x30e   : > { %v1874_v32 = vpop.eup %1873  ;;  %v1340_v34 = vadd.f32 %v2466_v23, %v1301_v36  ;;  %v1204_v57 = vadd.f32 1e-05, %v1172_v0  ;;  %v1207_v28 = vadd.f32 1e-05, %v1175_v53  ;;  %v1177_v16 = vmul.f32 0.0078125, %v1144_v6 }
 0x30f   : > { %v1435_v22 = vsel %vm1371_vm1, %v1339_v9, %v1403_v26  ;;  %v1337_v46 = vadd.f32 %v2466_v23, %v1298_v13  ;;  %v1260_v11 = vmul.f32 %v1874_v32, %v2390_v31  ;;  %v1208_v30 = vadd.f32 1e-05, %v1176_v12 }
 0x310   : > { %v1876_v59 = vpop.eup %1875  ;;  %1467 = vst [vmem:[%s2478_s29 + $0x90] sm:$0xff] %v1435_v22  ;;  %vm1372_vm2 = vcmp.ge.f32.partialorder %v1340_v34, 0.0  ;;  %v1404_v42 = vmul.f32 0.01, %v1340_v34  ;;  %1889 = vrsqrt.f32 %v1204_v57  ;;  %v1209_v44 = vadd.f32 1e-05, %v1177_v16  ;;  %v1146_v40 = vpop.xlane.xlu1 %1145 }
 0x311   : > { %v1878_v61 = vpop.eup %1877  ;;  %vm1369_vm3 = vcmp.ge.f32.partialorder %v1337_v46, 0.0  ;;  %v1401_v15 = vmul.f32 0.01, %v1337_v46  ;;  %v1299_v48 = vmul.f32 %v2459_v10, %v1260_v11  ;;  %v1265_v50 = vmul.f32 %v1876_v59, %v2395_v33 }
 0x312   : > { %v1880_v19 = vpop.eup %1879  ;;  %v1436_v21 = vsel %vm1372_vm2, %v1340_v34, %v1404_v42  ;;  %v1266_v31 = vmul.f32 %v1878_v61, %v2400_v35  ;;  %1891 = vrsqrt.f32 %v1207_v28  ;;  %v1178_v63 = vmul.f32 0.0078125, %v1146_v40 }
 0x313   : > { %1468 = vst [vmem:[%s2478_s29 + $0x98] sm:$0xff] %v1436_v21  ;;  %v1433_v54 = vsel %vm1369_vm3, %v1337_v46, %v1401_v15  ;;  %v1338_v52 = vadd.f32 %v2466_v23, %v1299_v48  ;;  %v1304_v20 = vmul.f32 %v2459_v10, %v1265_v50  ;;  %v1263_v56 = vmul.f32 %v1880_v19, %v2405_v37 }
 0x314   : > { %1465 = vst [vmem:[%s2478_s29 + $0x80] sm:$0xff] %v1433_v54  ;;  %v1305_v1 = vmul.f32 %v2459_v10, %v1266_v31  ;;  %1893 = vrsqrt.f32 %v1208_v30  ;;  %v1210_v27 = vadd.f32 1e-05, %v1178_v63 }
 0x315   : > { %v1882_v33 = vpop.eup %1881  ;;  %vm1370_vm4 = vcmp.ge.f32.partialorder %v1338_v52, 0.0  ;;  %v1402_v24 = vmul.f32 0.01, %v1338_v52  ;;  %v1343_v35 = vadd.f32 %v2466_v23, %v1304_v20  ;;  %v1302_v14 = vmul.f32 %v2459_v10, %v1263_v56 }
 0x316   : > { %v1344_v62 = vadd.f32 %v2466_v23, %v1305_v1  ;;  %v1264_v3 = vmul.f32 %v1882_v33, %v2410_v39  ;;  %1895 = vrsqrt.f32 %v1209_v44 }
 0x317   : > { %v1884_v29 = vpop.eup %1883  ;;  %v1434_v37 = vsel %vm1370_vm4, %v1338_v52, %v1402_v24  ;;  %vm1375_vm5 = vcmp.ge.f32.partialorder %v1343_v35, 0.0  ;;  %v1407_v58 = vmul.f32 0.01, %v1343_v35  ;;  %v1341_v2 = vadd.f32 %v2466_v23, %v1302_v14 }
 0x318   : > { %v1886_v5 = vpop.eup %1885  ;;  %1466 = vst [vmem:[%s2478_s29 + $0x88] sm:$0xff] %v1434_v37  ;;  %vm1376_vm6 = vcmp.ge.f32.partialorder %v1344_v62, 0.0  ;;  %v1408_v49 = vmul.f32 0.01, %v1344_v62  ;;  %v1303_v8 = vmul.f32 %v2459_v10, %v1264_v3  ;;  %v1269_v51 = vmul.f32 %v1884_v29, %v2415_v41 }
 0x319   : > { %v1888_v39 = vpop.eup %1887  ;;  %v1439_v60 = vsel %vm1375_vm5, %v1343_v35, %v1407_v58  ;;  %vm1373_vm7 = vcmp.ge.f32.partialorder %v1341_v2, 0.0  ;;  %v1405_v7 = vmul.f32 0.01, %v1341_v2  ;;  %v1270_v9 = vmul.f32 %v1886_v5, %v2420_v43 }
 0x31a   : > { %1471 = vst [vmem:[%s2478_s29 + $0xb0] sm:$0xff] %v1439_v60  ;;  %v1440_v38 = vsel %vm1376_vm6, %v1344_v62, %v1408_v49  ;;  %v1342_v36 = vadd.f32 %v2466_v23, %v1303_v8  ;;  %v1308_v0 = vmul.f32 %v2459_v10, %v1269_v51  ;;  %v1267_v53 = vmul.f32 %v1888_v39, %v2425_v45 }
 0x31b   : > { %1472 = vst [vmem:[%s2478_s29 + $0xb8] sm:$0xff] %v1440_v38  ;;  %v1437_v25 = vsel %vm1373_vm7, %v1341_v2, %v1405_v7  ;;  %v1309_v6 = vmul.f32 %v2459_v10, %v1270_v9  ;;  %1897 = vrsqrt.f32 %v1210_v27 }
 0x31c   : > { %1469 = vst [vmem:[%s2478_s29 + $0xa0] sm:$0xff] %v1437_v25  ;;  %vm1374_vm8 = vcmp.ge.f32.partialorder %v1342_v36, 0.0  ;;  %v1406_v41 = vmul.f32 0.01, %v1342_v36  ;;  %v1347_v26 = vadd.f32 %v2466_v23, %v1308_v0  ;;  %v1306_v43 = vmul.f32 %v2459_v10, %v1267_v53 }
 0x31d   : > { %v1890_v13 = vpop.eup %1889  ;;  %v1348_v12 = vadd.f32 %v2466_v23, %v1309_v6 }
 0x31e   : > { %v1438_v32 = vsel %vm1374_vm8, %v1342_v36, %v1406_v41  ;;  %vm1379_vm9 = vcmp.ge.f32.partialorder %v1347_v26, 0.0  ;;  %v1411_v45 = vmul.f32 0.01, %v1347_v26  ;;  %v1345_v34 = vadd.f32 %v2466_v23, %v1306_v43 }
 0x31f   : > { %v1892_v57 = vpop.eup %1891  ;;  %1470 = vst [vmem:[%s2478_s29 + $0xa8] sm:$0xff] %v1438_v32  ;;  %vm1380_vm10 = vcmp.ge.f32.partialorder %v1348_v12, 0.0  ;;  %v1412_v28 = vmul.f32 0.01, %v1348_v12  ;;  %v1268_v16 = vmul.f32 %v1890_v13, %v2430_v47 }
 0x320   : > { %v1443_v22 = vsel %vm1379_vm9, %v1347_v26, %v1411_v45  ;;  %vm1377_vm11 = vcmp.ge.f32.partialorder %v1345_v34, 0.0  ;;  %v1409_v46 = vmul.f32 0.01, %v1345_v34  ;;  %v1271_v11 = vmul.f32 %v1892_v57, %v2435_v4 }
 0x321   : > { %v1894_v30 = vpop.eup %1893  ;;  %1475 = vst [vmem:[%s2478_s29 + $0xd0] sm:$0xff] %v1443_v22  ;;  %v1444_v59 = vsel %vm1380_vm10, %v1348_v12, %v1412_v28  ;;  %v1307_v42 = vmul.f32 %v2459_v10, %v1268_v16 }
 0x322   : > { %1476 = vst [vmem:[%s2478_s29 + $0xd8] sm:$0xff] %v1444_v59  ;;  %v1441_v44 = vsel %vm1377_vm11, %v1345_v34, %v1409_v46  ;;  %v1310_v40 = vmul.f32 %v2459_v10, %v1271_v11  ;;  %v1272_v61 = vmul.f32 %v1894_v30, %v2442_v17 }
 0x323   : > { %v1896_v15 = vpop.eup %1895  ;;  %1473 = vst [vmem:[%s2478_s29 + $0xc0] sm:$0xff] %v1441_v44  ;;  %v1346_v47 = vadd.f32 %v2466_v23, %v1307_v42 }
 0x324   : > { %v1349_v48 = vadd.f32 %v2466_v23, %v1310_v40  ;;  %v1311_v4 = vmul.f32 %v2459_v10, %v1272_v61  ;;  %v1273_v50 = vmul.f32 %v1896_v15, %v2445_v18 }
 0x325   : > { %vm1378_vm12 = vcmp.ge.f32.partialorder %v1346_v47, 0.0  ;;  %v1410_v19 = vmul.f32 0.01, %v1346_v47 }
 0x326   : > { %vm1381_vm13 = vcmp.ge.f32.partialorder %v1349_v48, 0.0  ;;  %v1413_v21 = vmul.f32 0.01, %v1349_v48  ;;  %v1350_v31 = vadd.f32 %v2466_v23, %v1311_v4  ;;  %v1312_v17 = vmul.f32 %v2459_v10, %v1273_v50 }
 0x327   : > { %v1442_v63 = vsel %vm1378_vm12, %v1346_v47, %v1410_v19 }
 0x328   : > { %v1898_v54 = vpop.eup %1897  ;;  %1474 = vst [vmem:[%s2478_s29 + $0xc8] sm:$0xff] %v1442_v63  ;;  %v1445_v52 = vsel %vm1381_vm13, %v1349_v48, %v1413_v21  ;;  %vm1382_vm14 = vcmp.ge.f32.partialorder %v1350_v31, 0.0  ;;  %v1414_v20 = vmul.f32 0.01, %v1350_v31  ;;  %v1351_v18 = vadd.f32 %v2466_v23, %v1312_v17 }
 0x329   : > { %1477 = vst [vmem:[%s2478_s29 + $0xe0] sm:$0xff] %v1445_v52  ;;  %v1274_v56 = vmul.f32 %v1898_v54, %v2452_v55 }
 0x32a   : > { %v1446_v1 = vsel %vm1382_vm14, %v1350_v31, %v1414_v20  ;;  %vm1383_vm15 = vcmp.ge.f32.partialorder %v1351_v18, 0.0  ;;  %v1415_v33 = vmul.f32 0.01, %v1351_v18 }
 0x32b   : > { %1478 = vst [vmem:[%s2478_s29 + $0xe8] sm:$0xff] %v1446_v1  ;;  %v1313_v24 = vmul.f32 %v2459_v10, %v1274_v56 }
 0x32c   : > { %v1447_v35 = vsel %vm1383_vm15, %v1351_v18, %v1415_v33 }
 0x32d   : > { %1479 = vst [vmem:[%s2478_s29 + $0xf0] sm:$0xff] %v1447_v35  ;;  %v1352_v14 = vadd.f32 %v2466_v23, %v1313_v24 }
 0x32f   : > { %vm1384_vm0 = vcmp.ge.f32.partialorder %v1352_v14, 0.0  ;;  %v1416_v62 = vmul.f32 0.01, %v1352_v14 }
 0x331   : > { %v1448_v55 = vsel %vm1384_vm0, %v1352_v14, %v1416_v62 }
 0x332   : > { %1480 = vst [vmem:[%s2478_s29 + $0xf8] sm:$0xff] %v1448_v55 }
 0x333   : > { %1912 = shalt.err (!%p1909_p3)
}
 0x334   : > { %s1913_s20 = scalar_lea.hbm %s2603_s16, 4096  ;;  %s1917_s23 = scalar_lea.hbm %s2657_s7, 8192 }
 0x335   : > { %p1914_p4 = scmp.ne.s32.totalorder %s2603_s16, %s1913_s20  ;;  %p1918_p9 = scmp.lt.s32.totalorder %s2603_s16, %s2657_s7 }
 0x336   : > { %p1919_p10 = scmp.lt.s32.totalorder %s1917_s23, %s1913_s20 }
 0x337   : > { %p1915_p7 = pnand %p1914_p4, %p2042_p5 }
 0x338   : > { %p1920_p11 = por %p1919_p10, %p1918_p9 }
 0x339   : > { %p1916_p8 = pneg %p1915_p7 }
 0x33b   : > { %p1921_p12 = pnand %p1920_p11, %p1916_p8 }
 0x33d   : > { %1924 = shalt.err (!%p1921_p12)
}
 0x33e   : > { %s1962_s14 = smov 128   ;;  %s1963_s15 = smov 8  }
 0x33f   : > { %1766 = dma.vmem_to_hbm [thread:$0]  (%p2042_p5), %s2605_s13, 4096, %s2603_s16, %s2610_s28, %s1962_s14, %s1962_s14, %s1963_s15  }
 0x340 PF: > { %p1772_p13 = scmp.ge.s32.totalorder %s1959_s27, 2  ;;  %s1510_s8 = sand.u32 1, %s1947_s24  }
 0x341   : > { %s1511_s17 = scalar_lea.sflag [#allocation3], %s1510_s8 }
 0x342   : > { %p1769_p0 = pnand %p1772_p13, %p2046_p6 }
 0x344   : > { %p1770_p1 = pneg %p1769_p0 }
 0x346   : > { %1942 = dma.done.wait (%p1770_p1), %s1511_s17, 4096  }
 0x347   : > { %1944 = vsyncadd (%p1770_p1), %s1511_s17, 4294963200  ;;  %p17_p2 = scmp.ge.s32.totalorder %s2029_s30, 4   ;;  %s2660_s24 = smov %s1951_s25 }
 0x348   : > { %s2661_s25 = smov %s1955_s26  ;;  %s2662_s26 = smov %s2040_s10 }
 0x349   : > { %s2663_s27 = smov %s2029_s30  ;;  %19 = sbr.rel (!%p17_p2) target bundleno = 3 (0x3), region = 83 }
 0x34e   :  { %1516 = vsyncpa [#allocation3], 1 }
 0x34f   :  { %1518 = vsyncpa [#allocation3 + $0x1], 1 }

// kernel: tpu_custom_call.1
= control target key start
LH: loop header
LB: loop body
LE: loop exit
PB: predicated region body
PF: predicated region fallthrough
CT: control target
= control target key end

     0   :  { %12 = vsyncpa [#allocation3], 0  ;;  %s2650_s0 = inlined_call_operand.vmem [shape: bf16[512,64], index: 0, kind: input, shape index: {}]   ;;  %s2651_s1 = inlined_call_operand.vmem [shape: bf16[64,128], index: 1, kind: input, shape index: {}]   ;;  %s2652_s2 = inlined_call_operand.vmem [shape: f32[1,128], index: 2, kind: input, shape index: {}]   ;;  %s2653_s3 = inlined_call_operand.vmem [shape: bf16[128,128], index: 3, kind: input, shape index: {}]   ;;  %s2654_s4 = inlined_call_operand.vmem [shape: f32[1,128], index: 4, kind: input, shape index: {}]   ;;  %s2655_s5 = inlined_call_operand.vmem [shape: f32[1,128], index: 5, kind: input, shape index: {}]   ;;  %s2656_s6 = inlined_call_operand.vmem [shape: f32[1,128], index: 6, kind: input, shape index: {}]   ;;  %s2657_s7 = inlined_call_operand.hbm [shape: f32[512,128], index: 7, kind: output, shape index: {}]  }
   0x1   :  { %14 = vsyncpa [#allocation3 + $0x1], 0  ;;  %s2004_s24 = smov 0   ;;  %s2006_s25 = smov 0  }
   0x2   :  { %s2008_s26 = smov 0   ;;  %s2010_s27 = smov 0  }
   0x3 LB: > { %s2025_s28 = sadd.s32 4294967295, %s1959_s27   ;;  %s1557_s29 = sadd.s32 4294967294, %s1959_s27   ;;  %s1959_s27 = sphi %s2010_s27, %s2663_s27   ;;  %s1955_s26 = sphi %s2008_s26, %s2662_s26   ;;  %s1951_s25 = sphi %s2006_s25, %s2661_s25   ;;  %s1947_s24 = sphi %s2004_s24, %s2660_s24  }
   0x4   : > { %s2029_s30 = sadd.s32 1, %s1959_s27   ;;  %s179_s8 = sadd.s32 1, %s1955_s26 }
   0x5   : > { %s176_s9 = ssub.s32 %s1959_s27, %s2029_s30  ;;  %p189_p0 = scmp.ne.s32.totalorder %s1955_s26, %s1951_s25 }
   0x6   : > { %p177_p1 = scmp.eq.s32.totalorder %s176_s9, 0  ;;  %p190_p2 = scmp.eq.s32.totalorder %s2025_s28, 1 }
   0x7   : > { %p195_p3 = scmp.ne.s32.totalorder %s1951_s25, %s1947_s24  ;;  %p196_p4 = scmp.eq.s32.totalorder %s1557_s29, 1 }
   0x8   : > { %s2040_s10 = scalar_select %p177_p1, %s1955_s26, %s179_s8  }
   0x9   : > { %p2042_p5 = por %p190_p2, %p189_p0  ;;  %p2046_p6 = por %p196_p4, %p195_p3 }
   0xa   : > { %p1560_p7 = scmp.ge.s32.totalorder %s1959_s27, 1  ;;  %p241_p8 = scmp.lt.s32.totalorder %s1959_s27, 3 }
   0xc   : > { %p242_p9 = pnand %p1560_p7, %p241_p8 }
   0xd   : > { %s1562_s15 = sshll.u32 (!%p242_p9), %s2025_s28, 5  ;;  %s270_s20 = sand.u32 (!%p242_p9), 1, %s1951_s25  }
   0xe   : > { %245 = sbr.rel (%p242_p9) target bundleno = 832 (0x340), region = 48  ;;  %p274_p10 = scmp.lt.s32.totalorder (!%p242_p9), %s1562_s15, 63 }
   0xf   : > { %s1561_s23 = sshll.u32 (!%p242_p9), %s270_s20, 8  ;;  %s1617_s9 = sshll.u32 (!%p242_p9), %s2025_s28, 12 }
  0x10   : > { %s2478_s29 = scalar_lea.vmem (!%p242_p9), [#allocation2], %s1561_s23  ;;  %s2603_s16 = scalar_lea.hbm (!%p242_p9), %s2657_s7, %s1617_s9 }
  0x11   : > { %s1495_s13 = sshll.u32 (!%p242_p9), %s2478_s29, 4  ;;  %s2610_s28 = scalar_lea.sflag (!%p242_p9), [#allocation3], %s270_s20  ;;  %s2605_s13 = int_to_ptr.vmem [resolvable:$true] %s1495_s13 }
  0x12   : > { %s1961_s17 = smov (!%p242_p9), [#allocation2]  }
  0x13   : > { %v1807_v0 = vld [vmem:[%s2651_s1 + $0x18] sm:$0xff]   ;;  %v1808_v1 = vld [vmem:[%s2651_s1 + $0x10] sm:$0xff]   ;;  %v1809_v2 = vld [vmem:[%s2651_s1 + $0x8] sm:$0xff]   ;;  %s2665_s15 = smov (!%p274_p10, %s1562_s15), 63  ;;  %vm432_vm0 = vcmask 523264   ;;  %s1903_s18 = sshll.u32 %s1961_s17, 4  ;;  %s1904_s18 = int_to_ptr.vmem [resolvable:$false] %s1903_s18 }
  0x14   : > { %1662 = vmatprep.subr.bf16.mxu0 %v1807_v0  ;;  %v1827_v3 = vld [vmem:[%s2653_s3 + $0x38] sm:$0xff]   ;;  %s1563_s22 = sshll.u32 %s2665_s15, 2  ;;  %v1828_v4 = vld [vmem:[%s2653_s3 + $0x30] sm:$0xff]   ;;  %v1810_v6 = vld [vmem:[%s2651_s1] sm:$0xff]   ;;  %s1905_s19 = scalar_lea.vmem %s1904_s18, 8192 }
  0x15   : > { %1663 = vmatpush3.bf16.msra.mxu0 %v1807_v0  ;;  %s2068_s8 = scalar_lea.vmem %s2650_s0, %s1563_s22  ;;  %1750 = vmatprep.subr.bf16.mxu1 %v1827_v3  ;;  %v1829_v7 = vld [vmem:[%s2653_s3 + $0x28] sm:$0xff]   ;;  %v1830_v12 = vld [vmem:[%s2653_s3 + $0x20] sm:$0xff]   ;;  %v1831_v13 = vld [vmem:[%s2653_s3 + $0x18] sm:$0xff]   ;;  %p1906_p0 = scmp.lt.s32.totalorder %s2605_s13, %s1904_s18 }
  0x16   : > { %1664 = vmatprep.subr.bf16.mxu0 %v1808_v1  ;;  %v1811_v5 = vld [vmem:[%s2068_s8] sm:$0xff]   ;;  %1758 = vmatpush3.bf16.msra.mxu1 %v1827_v3  ;;  %v1812_v8 = vld [vmem:[%s2068_s8 + $0x8] sm:$0xff]   ;;  %v1813_v9 = vld [vmem:[%s2068_s8 + $0x10] sm:$0xff]  }
  0x17   : > { %1751 = vmatprep.subr.bf16.mxu1 %v1828_v4  ;;  %1670 = vmatprep.mubr.msk.bf16.mxu0 %vm432_vm0, %v1811_v5  ;;  %v1814_v10 = vld [vmem:[%s2068_s8 + $0x18] sm:$0xff]   ;;  %v1815_v11 = vld [vmem:[%s2068_s8 + $0x20] sm:$0xff]   ;;  %v1832_v14 = vld [vmem:[%s2653_s3 + $0x10] sm:$0xff]  }
  0x18   : > { %v1816_v15 = vld [vmem:[%s2068_s8 + $0x28] sm:$0xff]   ;;  %v1817_v16 = vld [vmem:[%s2068_s8 + $0x30] sm:$0xff]   ;;  %v1818_v18 = vld [vmem:[%s2068_s8 + $0x38] sm:$0xff]  }
  0x19   : > { %1665 = vmatpush3.bf16.msra.mxu0 %v1808_v1  ;;  %v1833_v17 = vld [vmem:[%s2653_s3 + $0x8] sm:$0xff]   ;;  %v1819_v19 = vld [vmem:[%s2068_s8 + $0x40] sm:$0xff]   ;;  %v1821_v21 = vld [vmem:[%s2068_s8 + $0x50] sm:$0xff]  }
  0x1a   : > { %1666 = vmatprep.subr.bf16.mxu0 %v1809_v2  ;;  %1759 = vmatpush3.bf16.msra.mxu1 %v1828_v4  ;;  %v1820_v20 = vld [vmem:[%s2068_s8 + $0x48] sm:$0xff]   ;;  %v1822_v22 = vld [vmem:[%s2068_s8 + $0x58] sm:$0xff]   ;;  %v1823_v23 = vld [vmem:[%s2068_s8 + $0x60] sm:$0xff]  }
  0x1b   : > { %1752 = vmatprep.subr.bf16.mxu1 %v1829_v7  ;;  %v1824_v24 = vld [vmem:[%s2068_s8 + $0x68] sm:$0xff]   ;;  %v1825_v25 = vld [vmem:[%s2068_s8 + $0x70] sm:$0xff]   ;;  %v1826_v26 = vld [vmem:[%s2068_s8 + $0x78] sm:$0xff]   ;;  %s1899_s8 = scalar_lea.vmem %s2605_s13, 4096 }
  0x1c   : > { %v1834_v27 = vld [vmem:[%s2653_s3] sm:$0xff]   ;;  %p1900_p11 = scmp.ne.s32.totalorder %s2605_s13, %s1899_s8  ;;  %p1907_p1 = scmp.lt.s32.totalorder %s1905_s19, %s1899_s8 }
  0x1d   : > { %1667 = vmatpush3.bf16.msra.mxu0 %v1809_v2  ;;  %v2129_v30 = vld [vmem:[%s2652_s2] ss:$0 sm:$0xff] }
  0x1e   : > { %1668 = vmatprep.subr.bf16.mxu0 %v1810_v6  ;;  %1760 = vmatpush3.bf16.msra.mxu1 %v1829_v7  ;;  %p1901_p12 = pnand %p1900_p11, %p2042_p5  ;;  %p1908_p2 = por %p1907_p1, %p1906_p0 }
  0x1f   : > { %1753 = vmatprep.subr.bf16.mxu1 %v1830_v12 }
  0x20   : > { %p1902_p13 = pneg %p1901_p12 }
  0x21   : > { %1669 = vmatpush3.bf16.msra.mxu0 %v1810_v6 }
  0x22   : > { %1702 = vmatprep.subr.bf16.mxu0 %v1827_v3  ;;  %1761 = vmatpush3.bf16.msra.mxu1 %v1830_v12  ;;  %p1909_p3 = pnand %p1908_p2, %p1902_p13 }
  0x23   : > { %1754 = vmatprep.subr.bf16.mxu1 %v1831_v13 }
  0x24   : > { %1671 = vmatmul.mubr.msk.bf16.vlgmr.msra.gmra.mxu0 %vm432_vm0, %v1812_v8 }
  0x25   : > { %1674 = vmatprep.mubr.msk.bf16.mxu0 %vm432_vm0, %v1813_v9  ;;  %1703 = vmatpush3.bf16.msra.mxu0 %v1827_v3 }
  0x26   : > { %1704 = vmatprep.subr.bf16.mxu0 %v1828_v4  ;;  %1762 = vmatpush3.bf16.msra.mxu1 %v1831_v13 }
  0x27   : > { %1755 = vmatprep.subr.bf16.mxu1 %v1832_v14 }
  0x29   : > { %1705 = vmatpush3.bf16.msra.mxu0 %v1828_v4 }
  0x2a   : > { %1706 = vmatprep.subr.bf16.mxu0 %v1829_v7  ;;  %1763 = vmatpush3.bf16.msra.mxu1 %v1832_v14 }
  0x2b   : > { %1756 = vmatprep.subr.bf16.mxu1 %v1833_v17 }
  0x2c   : > { %1675 = vmatmul.mubr.msk.bf16.gmra.mxu0 %vm432_vm0, %v1814_v10 }
  0x2d   : > { %1678 = vmatprep.mubr.msk.bf16.mxu0 %vm432_vm0, %v1815_v11  ;;  %1707 = vmatpush3.bf16.msra.mxu0 %v1829_v7 }
  0x2e   : > { %1708 = vmatprep.subr.bf16.mxu0 %v1830_v12  ;;  %1764 = vmatpush3.bf16.msra.mxu1 %v1833_v17 }
  0x2f   : > { %1757 = vmatprep.subr.bf16.mxu1 %v1834_v27 }
  0x31   : > { %1709 = vmatpush3.bf16.msra.mxu0 %v1830_v12 }
  0x32   : > { %1710 = vmatprep.subr.bf16.mxu0 %v1831_v13  ;;  %1765 = vmatpush3.bf16.msra.mxu1 %v1834_v27 }
  0x34   : > { %1679 = vmatmul.mubr.msk.bf16.gmra.mxu0 %vm432_vm0, %v1816_v15 }
  0x35   : > { %1682 = vmatprep.mubr.msk.bf16.mxu0 %vm432_vm0, %v1817_v16  ;;  %1711 = vmatpush3.bf16.msra.mxu0 %v1831_v13 }
  0x36   : > { %1712 = vmatprep.subr.bf16.mxu0 %v1832_v14 }
  0x39   : > { %1713 = vmatpush3.bf16.msra.mxu0 %v1832_v14 }
  0x3a   : > { %1714 = vmatprep.subr.bf16.mxu0 %v1833_v17 }
  0x3c   : > { %1683 = vmatmul.mubr.msk.bf16.gmra.mxu0 %vm432_vm0, %v1818_v18 }
  0x3d   : > { %1686 = vmatprep.mubr.msk.bf16.mxu0 %vm432_vm0, %v1819_v19  ;;  %1715 = vmatpush3.bf16.msra.mxu0 %v1833_v17 }
  0x3e   : > { %1716 = vmatprep.subr.bf16.mxu0 %v1834_v27 }
  0x41   : > { %1717 = vmatpush3.bf16.msra.mxu0 %v1834_v27 }
  0x44   : > { %1687 = vmatmul.mubr.msk.bf16.gmra.mxu0 %vm432_vm0, %v1820_v20 }
  0x45   : > { %1690 = vmatprep.mubr.msk.bf16.mxu0 %vm432_vm0, %v1821_v21 }
  0x4c   : > { %1691 = vmatmul.mubr.msk.bf16.gmra.mxu0 %vm432_vm0, %v1822_v22 }
  0x4d   : > { %1694 = vmatprep.mubr.msk.bf16.mxu0 %vm432_vm0, %v1823_v23 }
  0x54   : > { %1695 = vmatmul.mubr.msk.bf16.gmra.mxu0 %vm432_vm0, %v1824_v24 }
  0x55   : > { %1698 = vmatprep.mubr.msk.bf16.mxu0 %vm432_vm0, %v1825_v25 }
  0x5c   : > { %1699 = vmatmul.mubr.msk.bf16.gmra.mxu0 %vm432_vm0, %v1826_v26 }
  0xe4   : > { %v1672_v28 = vpop.f32.mrf.mxu0 }
  0xe5   : > { %v524_v34 = vadd.f32 %v1672_v28, %v2129_v30 }
  0xe6   : > { %v515_v29 = vpop.f32.mrf.mxu0 }
  0xe7   : > { %v516_v32 = vadd.f32 %v2129_v30, %v515_v29  ;;  %v644_v41 = vmax.f32 %v524_v34, 0.0 }
  0xe8   : > { %v1673_v31 = vpop.f32.mrf.mxu0 }
  0xe9   : > { %v527_v33 = vadd.f32 %v1673_v31, %v2129_v30  ;;  %v642_v39 = vmax.f32 %v516_v32, 0.0 }
  0xea   : > { %v518_v35 = vpop.f32.mrf.mxu0 }
  0xeb   : > { %v519_v36 = vadd.f32 %v2129_v30, %v518_v35  ;;  %v645_v37 = vmax.f32 %v527_v33, 0.0 }
  0xec   : > { %v1676_v38 = vpop.f32.mrf.mxu0 }
  0xed   : > { %v643_v40 = vmax.f32 %v519_v36, 0.0  ;;  %v675_v44 = vpack.c.bf16 %v645_v37, %v644_v41  ;;  %v540_v48 = vadd.f32 %v1676_v38, %v2129_v30 }
  0xee   : > { %v531_v42 = vpop.f32.mrf.mxu0 }
  0xef   : > { %v674_v43 = vpack.c.bf16 %v643_v40, %v642_v39  ;;  %v532_v46 = vadd.f32 %v2129_v30, %v531_v42  ;;  %v648_v55 = vmax.f32 %v540_v48, 0.0 }
  0xf0   : > { %v1677_v45 = vpop.f32.mrf.mxu0 }
  0xf1   : > { %v543_v47 = vadd.f32 %v1677_v45, %v2129_v30  ;;  %1718 = vmatprep.mubr.bf16.mxu0 %v674_v43  ;;  %v646_v53 = vmax.f32 %v532_v46, 0.0 }
  0xf2   : > { %v534_v49 = vpop.f32.mrf.mxu0  ;;  %1719 = vmatmul.mubr.bf16.vlgmr.msra.gmra.mxu0 %v675_v44 }
  0xf3   : > { %v535_v50 = vadd.f32 %v2129_v30, %v534_v49  ;;  %v649_v51 = vmax.f32 %v543_v47, 0.0 }
  0xf4   : > { %v1680_v52 = vpop.f32.mrf.mxu0 }
  0xf5   : > { %v647_v54 = vmax.f32 %v535_v50, 0.0  ;;  %v677_v58 = vpack.c.bf16 %v649_v51, %v648_v55  ;;  %v556_v62 = vadd.f32 %v1680_v52, %v2129_v30 }
  0xf6   : > { %v547_v56 = vpop.f32.mrf.mxu0 }
  0xf7   : > { %v676_v57 = vpack.c.bf16 %v647_v54, %v646_v53  ;;  %v548_v60 = vadd.f32 %v2129_v30, %v547_v56  ;;  %v652_v5 = vmax.f32 %v556_v62, 0.0 }
  0xf8   : > { %v1681_v59 = vpop.f32.mrf.mxu0 }
  0xf9   : > { %v559_v61 = vadd.f32 %v1681_v59, %v2129_v30  ;;  %1722 = vmatprep.mubr.bf16.mxu1 %v676_v57  ;;  %v650_v3 = vmax.f32 %v548_v60, 0.0 }
  0xfa   : > { %v550_v63 = vpop.f32.mrf.mxu0  ;;  %1723 = vmatmul.mubr.bf16.vlgmr.msra.gmra.mxu1 %v677_v58 }
  0xfb   : > { %v551_v0 = vadd.f32 %v2129_v30, %v550_v63  ;;  %v653_v1 = vmax.f32 %v559_v61, 0.0 }
  0xfc   : > { %v1684_v2 = vpop.f32.mrf.mxu0 }
  0xfd   : > { %v651_v4 = vmax.f32 %v551_v0, 0.0  ;;  %v679_v8 = vpack.c.bf16 %v653_v1, %v652_v5  ;;  %v572_v12 = vadd.f32 %v1684_v2, %v2129_v30 }
  0xfe   : > { %v563_v6 = vpop.f32.mrf.mxu0 }
  0xff   : > { %v678_v7 = vpack.c.bf16 %v651_v4, %v650_v3  ;;  %v564_v10 = vadd.f32 %v2129_v30, %v563_v6  ;;  %v656_v19 = vmax.f32 %v572_v12, 0.0 }
 0x100   : > { %v1685_v9 = vpop.f32.mrf.mxu0 }
 0x101   : > { %v575_v11 = vadd.f32 %v1685_v9, %v2129_v30  ;;  %1726 = vmatprep.mubr.bf16.mxu1 %v678_v7  ;;  %v654_v17 = vmax.f32 %v564_v10, 0.0 }
 0x102   : > { %v566_v13 = vpop.f32.mrf.mxu0  ;;  %1727 = vmatmul.mubr.bf16.gmra.mxu1 %v679_v8 }
 0x103   : > { %v567_v14 = vadd.f32 %v2129_v30, %v566_v13  ;;  %v657_v15 = vmax.f32 %v575_v11, 0.0 }
 0x104   : > { %v1688_v16 = vpop.f32.mrf.mxu0 }
 0x105   : > { %v655_v18 = vmax.f32 %v567_v14, 0.0  ;;  %v681_v22 = vpack.c.bf16 %v657_v15, %v656_v19  ;;  %v588_v26 = vadd.f32 %v1688_v16, %v2129_v30  ;;  %v2166_v14 = vld [vmem:[%s2654_s4] ss:$0 sm:$0xff] }
 0x106   : > { %v579_v20 = vpop.f32.mrf.mxu0 }
 0x107   : > { %v680_v21 = vpack.c.bf16 %v655_v18, %v654_v17  ;;  %v580_v24 = vadd.f32 %v2129_v30, %v579_v20  ;;  %v660_v34 = vmax.f32 %v588_v26, 0.0 }
 0x108   : > { %v1689_v23 = vpop.f32.mrf.mxu0 }
 0x109   : > { %v591_v25 = vadd.f32 %v1689_v23, %v2129_v30  ;;  %1730 = vmatprep.mubr.bf16.mxu1 %v680_v21  ;;  %v658_v32 = vmax.f32 %v580_v24, 0.0 }
 0x10a   : > { %v582_v27 = vpop.f32.mrf.mxu0  ;;  %1731 = vmatmul.mubr.bf16.gmra.mxu1 %v681_v22 }
 0x10b   : > { %v583_v28 = vadd.f32 %v2129_v30, %v582_v27  ;;  %v661_v29 = vmax.f32 %v591_v25, 0.0 }
 0x10c   : > { %v1692_v31 = vpop.f32.mrf.mxu0 }
 0x10d   : > { %v659_v33 = vmax.f32 %v583_v28, 0.0  ;;  %v683_v37 = vpack.c.bf16 %v661_v29, %v660_v34  ;;  %v604_v41 = vadd.f32 %v1692_v31, %v2129_v30 }
 0x10e   : > { %v595_v35 = vpop.f32.mrf.mxu0 }
 0x10f   : > { %v682_v36 = vpack.c.bf16 %v659_v33, %v658_v32  ;;  %v596_v39 = vadd.f32 %v2129_v30, %v595_v35  ;;  %v664_v48 = vmax.f32 %v604_v41, 0.0 }
 0x110   : > { %v1693_v38 = vpop.f32.mrf.mxu0 }
 0x111   : > { %v607_v40 = vadd.f32 %v1693_v38, %v2129_v30  ;;  %1734 = vmatprep.mubr.bf16.mxu1 %v682_v36  ;;  %v662_v46 = vmax.f32 %v596_v39, 0.0 }
 0x112   : > { %v598_v42 = vpop.f32.mrf.mxu0  ;;  %1735 = vmatmul.mubr.bf16.gmra.mxu1 %v683_v37 }
 0x113   : > { %v599_v43 = vadd.f32 %v2129_v30, %v598_v42  ;;  %v665_v44 = vmax.f32 %v607_v40, 0.0 }
 0x114   : > { %v1696_v45 = vpop.f32.mrf.mxu0 }
 0x115   : > { %v663_v47 = vmax.f32 %v599_v43, 0.0  ;;  %v685_v51 = vpack.c.bf16 %v665_v44, %v664_v48  ;;  %v620_v55 = vadd.f32 %v1696_v45, %v2129_v30 }
 0x116   : > { %v611_v49 = vpop.f32.mrf.mxu0 }
 0x117   : > { %v684_v50 = vpack.c.bf16 %v663_v47, %v662_v46  ;;  %v612_v53 = vadd.f32 %v2129_v30, %v611_v49  ;;  %v668_v62 = vmax.f32 %v620_v55, 0.0 }
 0x118   : > { %v1697_v52 = vpop.f32.mrf.mxu0 }
 0x119   : > { %v623_v54 = vadd.f32 %v1697_v52, %v2129_v30  ;;  %1738 = vmatprep.mubr.bf16.mxu1 %v684_v50  ;;  %v666_v60 = vmax.f32 %v612_v53, 0.0 }
 0x11a   : > { %v614_v56 = vpop.f32.mrf.mxu0  ;;  %1739 = vmatmul.mubr.bf16.gmra.mxu1 %v685_v51 }
 0x11b   : > { %v615_v57 = vadd.f32 %v2129_v30, %v614_v56  ;;  %v669_v58 = vmax.f32 %v623_v54, 0.0 }
 0x11c   : > { %v1700_v59 = vpop.f32.mrf.mxu0 }
 0x11d   : > { %v667_v61 = vmax.f32 %v615_v57, 0.0  ;;  %v687_v1 = vpack.c.bf16 %v669_v58, %v668_v62  ;;  %v636_v5 = vadd.f32 %v1700_v59, %v2129_v30 }
 0x11e   : > { %v627_v63 = vpop.f32.mrf.mxu0 }
 0x11f   : > { %v686_v0 = vpack.c.bf16 %v667_v61, %v666_v60  ;;  %v628_v3 = vadd.f32 %v2129_v30, %v627_v63  ;;  %v672_v11 = vmax.f32 %v636_v5, 0.0 }
 0x120   : > { %v1701_v2 = vpop.f32.mrf.mxu0 }
 0x121   : > { %v639_v4 = vadd.f32 %v1701_v2, %v2129_v30  ;;  %1742 = vmatprep.mubr.bf16.mxu1 %v686_v0  ;;  %v670_v9 = vmax.f32 %v628_v3, 0.0 }
 0x122   : > { %v630_v6 = vpop.f32.mrf.mxu0  ;;  %1743 = vmatmul.mubr.bf16.gmra.mxu1 %v687_v1 }
 0x123   : > { %v631_v7 = vadd.f32 %v2129_v30, %v630_v6  ;;  %v673_v8 = vmax.f32 %v639_v4, 0.0 }
 0x125   : > { %v671_v10 = vmax.f32 %v631_v7, 0.0  ;;  %v689_v13 = vpack.c.bf16 %v673_v8, %v672_v11 }
 0x127   : > { %v688_v12 = vpack.c.bf16 %v671_v10, %v670_v9 }
 0x129   : > { %1746 = vmatprep.mubr.bf16.mxu1 %v688_v12 }
 0x12a   : > { %1747 = vmatmul.mubr.bf16.gmra.mxu1 %v689_v13 }
 0x1b2   : > { %v1720_v15 = vpop.f32.mrf.mxu0 }
 0x1b3   : > { %v2169_v16 = vadd.f32 %v1720_v15, %v2166_v14 }
 0x1b4   : > { %v795_v17 = vpop.f32.mrf.mxu0 }
 0x1b5   : > { %v2172_v30 = vadd.f32 %v2166_v14, %v795_v17  ;;  %926 = vadd.xlane.f32.xlu1 %v2169_v16 }
 0x1b6   : > { %v1721_v18 = vpop.f32.mrf.mxu0 }
 0x1b7   : > { %v2176_v19 = vadd.f32 %v1721_v18, %v2166_v14  ;;  %922 = vadd.xlane.f32.xlu0 %v2172_v30 }
 0x1b8   : > { %v798_v20 = vpop.f32.mrf.mxu0 }
 0x1b9   : > { %v2180_v21 = vadd.f32 %v2166_v14, %v798_v20  ;;  %928 = vadd.xlane.f32.xlu1 %v2176_v19 }
 0x1ba   : > { %v1724_v22 = vpop.f32.mrf.mxu1 }
 0x1bb   : > { %924 = vadd.xlane.f32.xlu0 %v2180_v21  ;;  %v2185_v24 = vadd.f32 %v1724_v22, %v2166_v14 }
 0x1bc   : > { %v811_v23 = vpop.f32.mrf.mxu1 }
 0x1bd   : > { %v2192_v28 = vadd.f32 %v2166_v14, %v811_v23 }
 0x1be   : > { %v1725_v25 = vpop.f32.mrf.mxu1 }
 0x1bf   : > { %v2188_v26 = vadd.f32 %v1725_v25, %v2166_v14  ;;  %934 = vadd.xlane.f32.xlu0 %v2185_v24 }
 0x1c0   : > { %v814_v27 = vpop.f32.mrf.mxu1 }
 0x1c1   : > { %936 = vadd.xlane.f32.xlu1 %v2188_v26  ;;  %v2196_v31 = vadd.f32 %v2166_v14, %v814_v27 }
 0x1c2   : > { %v1728_v29 = vpop.f32.mrf.mxu1 }
 0x1c3   : > { %930 = vadd.xlane.f32.xlu0 %v2192_v28  ;;  %v2200_v33 = vadd.f32 %v1728_v29, %v2166_v14 }
 0x1c4   : > { %v827_v32 = vpop.f32.mrf.mxu1 }
 0x1c5   : > { %932 = vadd.xlane.f32.xlu1 %v2196_v31  ;;  %v2208_v37 = vadd.f32 %v2166_v14, %v827_v32 }
 0x1c6   : > { %v1729_v34 = vpop.f32.mrf.mxu1 }
 0x1c7   : > { %v2204_v35 = vadd.f32 %v1729_v34, %v2166_v14  ;;  %942 = vadd.xlane.f32.xlu0 %v2200_v33 }
 0x1c8   : > { %v830_v36 = vpop.f32.mrf.mxu1 }
 0x1c9   : > { %944 = vadd.xlane.f32.xlu1 %v2204_v35  ;;  %v2212_v39 = vadd.f32 %v2166_v14, %v830_v36 }
 0x1ca   : > { %v1732_v38 = vpop.f32.mrf.mxu1 }
 0x1cb   : > { %938 = vadd.xlane.f32.xlu0 %v2208_v37  ;;  %v2216_v41 = vadd.f32 %v1732_v38, %v2166_v14 }
 0x1cc   : > { %v843_v40 = vpop.f32.mrf.mxu1 }
 0x1cd   : > { %940 = vadd.xlane.f32.xlu1 %v2212_v39  ;;  %v2224_v45 = vadd.f32 %v2166_v14, %v843_v40 }
 0x1ce   : > { %v1733_v42 = vpop.f32.mrf.mxu1 }
 0x1cf   : > { %v2220_v43 = vadd.f32 %v1733_v42, %v2166_v14  ;;  %950 = vadd.xlane.f32.xlu0 %v2216_v41 }
 0x1d0   : > { %v846_v44 = vpop.f32.mrf.mxu1 }
 0x1d1   : > { %952 = vadd.xlane.f32.xlu1 %v2220_v43  ;;  %v2228_v47 = vadd.f32 %v2166_v14, %v846_v44 }
 0x1d2   : > { %v1736_v46 = vpop.f32.mrf.mxu1 }
 0x1d3   : > { %946 = vadd.xlane.f32.xlu0 %v2224_v45  ;;  %v2232_v49 = vadd.f32 %v1736_v46, %v2166_v14 }
 0x1d4   : > { %v859_v48 = vpop.f32.mrf.mxu1 }
 0x1d5   : > { %948 = vadd.xlane.f32.xlu1 %v2228_v47  ;;  %v2240_v53 = vadd.f32 %v2166_v14, %v859_v48 }
 0x1d6   : > { %v1737_v50 = vpop.f32.mrf.mxu1 }
 0x1d7   : > { %v2236_v51 = vadd.f32 %v1737_v50, %v2166_v14  ;;  %958 = vadd.xlane.f32.xlu0 %v2232_v49 }
 0x1d8   : > { %v862_v52 = vpop.f32.mrf.mxu1 }
 0x1d9   : > { %960 = vadd.xlane.f32.xlu1 %v2236_v51  ;;  %v2244_v55 = vadd.f32 %v2166_v14, %v862_v52 }
 0x1da   : > { %v1740_v54 = vpop.f32.mrf.mxu1 }
 0x1db   : > { %954 = vadd.xlane.f32.xlu0 %v2240_v53  ;;  %v2248_v57 = vadd.f32 %v1740_v54, %v2166_v14 }
 0x1dc   : > { %v875_v56 = vpop.f32.mrf.mxu1 }
 0x1dd   : > { %956 = vadd.xlane.f32.xlu1 %v2244_v55  ;;  %v2256_v61 = vadd.f32 %v2166_v14, %v875_v56 }
 0x1de   : > { %v1741_v58 = vpop.f32.mrf.mxu1 }
 0x1df   : > { %v2252_v59 = vadd.f32 %v1741_v58, %v2166_v14  ;;  %966 = vadd.xlane.f32.xlu0 %v2248_v57 }
 0x1e0   : > { %v878_v60 = vpop.f32.mrf.mxu1 }
 0x1e1   : > { %968 = vadd.xlane.f32.xlu1 %v2252_v59  ;;  %v2260_v63 = vadd.f32 %v2166_v14, %v878_v60 }
 0x1e2   : > { %v1744_v62 = vpop.f32.mrf.mxu1 }
 0x1e3   : > { %962 = vadd.xlane.f32.xlu0 %v2256_v61  ;;  %v2264_v1 = vadd.f32 %v1744_v62, %v2166_v14 }
 0x1e4   : > { %v891_v0 = vpop.f32.mrf.mxu1 }
 0x1e5   : > { %964 = vadd.xlane.f32.xlu1 %v2260_v63  ;;  %v2272_v5 = vadd.f32 %v2166_v14, %v891_v0 }
 0x1e6   : > { %v1745_v2 = vpop.f32.mrf.mxu1 }
 0x1e7   : > { %v2268_v3 = vadd.f32 %v1745_v2, %v2166_v14  ;;  %974 = vadd.xlane.f32.xlu0 %v2264_v1 }
 0x1e8   : > { %v894_v4 = vpop.f32.mrf.mxu1 }
 0x1e9   : > { %976 = vadd.xlane.f32.xlu1 %v2268_v3  ;;  %v2276_v7 = vadd.f32 %v2166_v14, %v894_v4 }
 0x1ea   : > { %v1748_v6 = vpop.f32.mrf.mxu1 }
 0x1eb   : > { %970 = vadd.xlane.f32.xlu0 %v2272_v5  ;;  %v2285_v12 = vadd.f32 %v1748_v6, %v2166_v14 }
 0x1ec   : > { %v907_v8 = vpop.f32.mrf.mxu1 }
 0x1ed   : > { %v2280_v9 = vadd.f32 %v2166_v14, %v907_v8  ;;  %972 = vadd.xlane.f32.xlu1 %v2276_v7 }
 0x1ee   : > { %v1749_v10 = vpop.f32.mrf.mxu1 }
 0x1ef   : > { %978 = vadd.xlane.f32.xlu0 %v2280_v9  ;;  %v2293_v15 = vadd.f32 %v1749_v10, %v2166_v14 }
 0x1f0   : > { %v910_v11 = vpop.f32.mrf.mxu1 }
 0x1f1   : > { %v2288_v13 = vadd.f32 %v2166_v14, %v910_v11 }
 0x1f3   : > { %980 = vadd.xlane.f32.xlu1 %v2288_v13  ;;  %982 = vadd.xlane.f32.xlu0 %v2285_v12 }
 0x1f7   : > { %984 = vadd.xlane.f32.xlu1 %v2293_v15 }
 0x23e   : > { %v927_v17 = vpop.xlane.xlu1 %926 }
 0x23f   : > { %v989_v18 = vmul.f32 0.0078125, %v927_v17 }
 0x240   : > { %v923_v20 = vpop.xlane.xlu0 %922 }
 0x241   : > { %v2297_v22 = vsub.f32 %v2169_v16, %v989_v18  ;;  %v987_v23 = vmul.f32 0.0078125, %v923_v20 }
 0x242   : > { %v929_v25 = vpop.xlane.xlu1 %928 }
 0x243   : > { %v2300_v27 = vsub.f32 %v2172_v30, %v987_v23  ;;  %v990_v29 = vmul.f32 0.0078125, %v929_v25  ;;  %v1053_v32 = vmul.f32 %v2297_v22, %v2297_v22 }
 0x244   : > { %v925_v34 = vpop.xlane.xlu0 %924 }
 0x245   : > { %v2305_v14 = vsub.f32 %v2176_v19, %v990_v29  ;;  %v988_v36 = vmul.f32 0.0078125, %v925_v34  ;;  %1087 = vadd.xlane.f32.xlu0 %v1053_v32  ;;  %v1051_v30 = vmul.f32 %v2300_v27, %v2300_v27 }
 0x247   : > { %v2308_v38 = vsub.f32 %v2180_v21, %v988_v36  ;;  %v1054_v16 = vmul.f32 %v2305_v14, %v2305_v14 }
 0x248   : > { %v935_v40 = vpop.xlane.xlu0 %934 }
 0x249   : > { %v993_v42 = vmul.f32 0.0078125, %v935_v40  ;;  %1089 = vadd.xlane.f32.xlu1 %v1054_v16  ;;  %1083 = vadd.xlane.f32.xlu0 %v1051_v30  ;;  %v1052_v48 = vmul.f32 %v2308_v38, %v2308_v38 }
 0x24a   : > { %v937_v44 = vpop.xlane.xlu1 %936 }
 0x24b   : > { %v2315_v46 = vsub.f32 %v2185_v24, %v993_v42  ;;  %v994_v19 = vmul.f32 0.0078125, %v937_v44 }
 0x24c   : > { %v931_v21 = vpop.xlane.xlu0 %930 }
 0x24d   : > { %v2320_v50 = vsub.f32 %v2188_v26, %v994_v19  ;;  %v991_v52 = vmul.f32 0.0078125, %v931_v21  ;;  %1085 = vadd.xlane.f32.xlu1 %v1052_v48  ;;  %v1057_v54 = vmul.f32 %v2315_v46, %v2315_v46 }
 0x24e   : > { %v933_v56 = vpop.xlane.xlu1 %932 }
 0x24f   : > { %v2325_v58 = vsub.f32 %v2192_v28, %v991_v52  ;;  %v992_v60 = vmul.f32 0.0078125, %v933_v56  ;;  %1095 = vadd.xlane.f32.xlu0 %v1057_v54  ;;  %v1058_v24 = vmul.f32 %v2320_v50, %v2320_v50 }
 0x250   : > { %v943_v62 = vpop.xlane.xlu0 %942 }
 0x251   : > { %v2330_v0 = vsub.f32 %v2196_v31, %v992_v60  ;;  %v997_v26 = vmul.f32 0.0078125, %v943_v62  ;;  %1097 = vadd.xlane.f32.xlu1 %v1058_v24  ;;  %v1055_v2 = vmul.f32 %v2325_v58, %v2325_v58 }
 0x252   : > { %v945_v4 = vpop.xlane.xlu1 %944 }
 0x253   : > { %v2335_v6 = vsub.f32 %v2200_v33, %v997_v26  ;;  %v998_v28 = vmul.f32 0.0078125, %v945_v4  ;;  %1091 = vadd.xlane.f32.xlu0 %v1055_v2  ;;  %v1056_v8 = vmul.f32 %v2330_v0, %v2330_v0 }
 0x254   : > { %v939_v10 = vpop.xlane.xlu0 %938 }
 0x255   : > { %v2340_v11 = vsub.f32 %v2204_v35, %v998_v28  ;;  %v995_v31 = vmul.f32 0.0078125, %v939_v10  ;;  %1093 = vadd.xlane.f32.xlu1 %v1056_v8  ;;  %v1061_v17 = vmul.f32 %v2335_v6, %v2335_v6 }
 0x256   : > { %v941_v18 = vpop.xlane.xlu1 %940 }
 0x257   : > { %v2345_v20 = vsub.f32 %v2208_v37, %v995_v31  ;;  %v996_v33 = vmul.f32 0.0078125, %v941_v18  ;;  %1103 = vadd.xlane.f32.xlu0 %v1061_v17  ;;  %v1062_v23 = vmul.f32 %v2340_v11, %v2340_v11 }
 0x258   : > { %v951_v25 = vpop.xlane.xlu0 %950 }
 0x259   : > { %v2350_v29 = vsub.f32 %v2212_v39, %v996_v33  ;;  %v1001_v35 = vmul.f32 0.0078125, %v951_v25  ;;  %1105 = vadd.xlane.f32.xlu1 %v1062_v23  ;;  %v1059_v32 = vmul.f32 %v2345_v20, %v2345_v20 }
 0x25a   : > { %v953_v34 = vpop.xlane.xlu1 %952 }
 0x25b   : > { %v2355_v36 = vsub.f32 %v2216_v41, %v1001_v35  ;;  %v1002_v37 = vmul.f32 0.0078125, %v953_v34  ;;  %1099 = vadd.xlane.f32.xlu0 %v1059_v32  ;;  %v1060_v16 = vmul.f32 %v2350_v29, %v2350_v29 }
 0x25c   : > { %v947_v30 = vpop.xlane.xlu0 %946 }
 0x25d   : > { %v2360_v40 = vsub.f32 %v2220_v43, %v1002_v37  ;;  %v999_v39 = vmul.f32 0.0078125, %v947_v30  ;;  %1101 = vadd.xlane.f32.xlu1 %v1060_v16  ;;  %v1065_v42 = vmul.f32 %v2355_v36, %v2355_v36 }
 0x25e   : > { %v949_v44 = vpop.xlane.xlu1 %948 }
 0x25f   : > { %v2365_v19 = vsub.f32 %v2224_v45, %v999_v39  ;;  %v1000_v41 = vmul.f32 0.0078125, %v949_v44  ;;  %1111 = vadd.xlane.f32.xlu0 %v1065_v42  ;;  %v1066_v48 = vmul.f32 %v2360_v40, %v2360_v40 }
 0x260   : > { %v959_v21 = vpop.xlane.xlu0 %958 }
 0x261   : > { %v2370_v52 = vsub.f32 %v2228_v47, %v1000_v41  ;;  %v1005_v43 = vmul.f32 0.0078125, %v959_v21  ;;  %1113 = vadd.xlane.f32.xlu1 %v1066_v48  ;;  %v1063_v54 = vmul.f32 %v2365_v19, %v2365_v19 }
 0x262   : > { %v961_v56 = vpop.xlane.xlu1 %960 }
 0x263   : > { %v2375_v60 = vsub.f32 %v2232_v49, %v1005_v43  ;;  %v1006_v45 = vmul.f32 0.0078125, %v961_v56  ;;  %1107 = vadd.xlane.f32.xlu0 %v1063_v54  ;;  %v1064_v24 = vmul.f32 %v2370_v52, %v2370_v52 }
 0x264   : > { %v955_v62 = vpop.xlane.xlu0 %954 }
 0x265   : > { %v2380_v26 = vsub.f32 %v2236_v51, %v1006_v45  ;;  %v1003_v47 = vmul.f32 0.0078125, %v955_v62  ;;  %1109 = vadd.xlane.f32.xlu1 %v1064_v24  ;;  %v1069_v2 = vmul.f32 %v2375_v60, %v2375_v60 }
 0x266   : > { %v957_v4 = vpop.xlane.xlu1 %956 }
 0x267   : > { %v2385_v28 = vsub.f32 %v2240_v53, %v1003_v47  ;;  %v1004_v49 = vmul.f32 0.0078125, %v957_v4  ;;  %1119 = vadd.xlane.f32.xlu0 %v1069_v2  ;;  %v1070_v8 = vmul.f32 %v2380_v26, %v2380_v26 }
 0x268   : > { %v967_v10 = vpop.xlane.xlu0 %966 }
 0x269   : > { %v2390_v31 = vsub.f32 %v2244_v55, %v1004_v49  ;;  %v1009_v51 = vmul.f32 0.0078125, %v967_v10  ;;  %1121 = vadd.xlane.f32.xlu1 %v1070_v8  ;;  %v1067_v17 = vmul.f32 %v2385_v28, %v2385_v28 }
 0x26a   : > { %v969_v18 = vpop.xlane.xlu1 %968 }
 0x26b   : > { %v2395_v33 = vsub.f32 %v2248_v57, %v1009_v51  ;;  %v1010_v53 = vmul.f32 0.0078125, %v969_v18  ;;  %1115 = vadd.xlane.f32.xlu0 %v1067_v17  ;;  %v1068_v23 = vmul.f32 %v2390_v31, %v2390_v31 }
 0x26c   : > { %v963_v25 = vpop.xlane.xlu0 %962 }
 0x26d   : > { %v2400_v35 = vsub.f32 %v2252_v59, %v1010_v53  ;;  %v1007_v55 = vmul.f32 0.0078125, %v963_v25  ;;  %1117 = vadd.xlane.f32.xlu1 %v1068_v23  ;;  %v1073_v32 = vmul.f32 %v2395_v33, %v2395_v33 }
 0x26e   : > { %v965_v34 = vpop.xlane.xlu1 %964 }
 0x26f   : > { %v2405_v37 = vsub.f32 %v2256_v61, %v1007_v55  ;;  %v1008_v57 = vmul.f32 0.0078125, %v965_v34  ;;  %1127 = vadd.xlane.f32.xlu0 %v1073_v32  ;;  %v1074_v16 = vmul.f32 %v2400_v35, %v2400_v35 }
 0x270   : > { %v975_v30 = vpop.xlane.xlu0 %974 }
 0x271   : > { %v2410_v39 = vsub.f32 %v2260_v63, %v1008_v57  ;;  %v1013_v59 = vmul.f32 0.0078125, %v975_v30  ;;  %1129 = vadd.xlane.f32.xlu1 %v1074_v16  ;;  %v1071_v42 = vmul.f32 %v2405_v37, %v2405_v37 }
 0x272   : > { %v977_v44 = vpop.xlane.xlu1 %976 }
 0x273   : > { %v2415_v41 = vsub.f32 %v2264_v1, %v1013_v59  ;;  %v1014_v61 = vmul.f32 0.0078125, %v977_v44  ;;  %1123 = vadd.xlane.f32.xlu0 %v1071_v42  ;;  %v1072_v48 = vmul.f32 %v2410_v39, %v2410_v39 }
 0x274   : > { %v971_v21 = vpop.xlane.xlu0 %970 }
 0x275   : > { %v2420_v43 = vsub.f32 %v2268_v3, %v1014_v61  ;;  %v1011_v63 = vmul.f32 0.0078125, %v971_v21  ;;  %1125 = vadd.xlane.f32.xlu1 %v1072_v48  ;;  %v1077_v54 = vmul.f32 %v2415_v41, %v2415_v41 }
 0x276   : > { %v973_v56 = vpop.xlane.xlu1 %972 }
 0x277   : > { %v2425_v45 = vsub.f32 %v2272_v5, %v1011_v63  ;;  %v1012_v1 = vmul.f32 0.0078125, %v973_v56  ;;  %1135 = vadd.xlane.f32.xlu0 %v1077_v54  ;;  %v1078_v24 = vmul.f32 %v2420_v43, %v2420_v43 }
 0x278   : > { %v979_v62 = vpop.xlane.xlu0 %978 }
 0x279   : > { %v2430_v47 = vsub.f32 %v2276_v7, %v1012_v1  ;;  %v1015_v3 = vmul.f32 0.0078125, %v979_v62  ;;  %1137 = vadd.xlane.f32.xlu1 %v1078_v24  ;;  %v1075_v2 = vmul.f32 %v2425_v45, %v2425_v45 }
 0x27b   : > { %v2435_v4 = vsub.f32 %v2280_v9, %v1015_v3  ;;  %1131 = vadd.xlane.f32.xlu0 %v1075_v2  ;;  %v1076_v5 = vmul.f32 %v2430_v47, %v2430_v47 }
 0x27c   : > { %v981_v49 = vpop.xlane.xlu1 %980  ;;  %v983_v8 = vpop.xlane.xlu0 %982 }
 0x27d   : > { %v1016_v10 = vmul.f32 0.0078125, %v981_v49  ;;  %v1017_v51 = vmul.f32 0.0078125, %v983_v8  ;;  %1133 = vadd.xlane.f32.xlu1 %v1076_v5  ;;  %v1079_v7 = vmul.f32 %v2435_v4, %v2435_v4 }
 0x27f   : > { %v2442_v17 = vsub.f32 %v2288_v13, %v1016_v10  ;;  %v2445_v18 = vsub.f32 %v2285_v12, %v1017_v51  ;;  %1139 = vadd.xlane.f32.xlu0 %v1079_v7  ;;  %v2459_v10 = vld [vmem:[%s2655_s5] ss:$0 sm:$0xff] }
 0x280   : > { %v985_v9 = vpop.xlane.xlu1 %984 }
 0x281   : > { %v1018_v53 = vmul.f32 0.0078125, %v985_v9  ;;  %v1080_v23 = vmul.f32 %v2442_v17, %v2442_v17  ;;  %v1081_v25 = vmul.f32 %v2445_v18, %v2445_v18 }
 0x283   : > { %v2452_v55 = vsub.f32 %v2293_v15, %v1018_v53  ;;  %1141 = vadd.xlane.f32.xlu1 %v1080_v23  ;;  %1143 = vadd.xlane.f32.xlu0 %v1081_v25  ;;  %v2466_v23 = vld [vmem:[%s2656_s6] ss:$0 sm:$0xff] }
 0x285   : > { %v1082_v13 = vmul.f32 %v2452_v55, %v2452_v55 }
 0x287   : > { %1145 = vadd.xlane.f32.xlu1 %v1082_v13 }
 0x2ce   : > { %v1088_v12 = vpop.xlane.xlu0 %1087 }
 0x2cf   : > { %v1149_v32 = vmul.f32 0.0078125, %v1088_v12 }
 0x2d1   : > { %v1181_v34 = vadd.f32 1e-05, %v1149_v32 }
 0x2d2   : > { %v1090_v57 = vpop.xlane.xlu1 %1089  ;;  %v1084_v16 = vpop.xlane.xlu0 %1083 }
 0x2d3   : > { %1835 = vrsqrt.f32 %v1181_v34  ;;  %v1150_v30 = vmul.f32 0.0078125, %v1090_v57  ;;  %v1147_v59 = vmul.f32 0.0078125, %v1084_v16 }
 0x2d5   : > { %v1182_v42 = vadd.f32 1e-05, %v1150_v30  ;;  %v1179_v44 = vadd.f32 1e-05, %v1147_v59 }
 0x2d6   : > { %v1086_v61 = vpop.xlane.xlu1 %1085 }
 0x2d7   : > { %1837 = vrsqrt.f32 %v1182_v42  ;;  %v1148_v15 = vmul.f32 0.0078125, %v1086_v61 }
 0x2d8   : > { %1839 = vrsqrt.f32 %v1179_v44  ;;  %v1096_v48 = vpop.xlane.xlu0 %1095 }
 0x2d9   : > { %v1180_v21 = vadd.f32 1e-05, %v1148_v15  ;;  %v1153_v63 = vmul.f32 0.0078125, %v1096_v48 }
 0x2da   : > { %v1098_v54 = vpop.xlane.xlu1 %1097 }
 0x2db   : > { %1841 = vrsqrt.f32 %v1180_v21  ;;  %v1185_v56 = vadd.f32 1e-05, %v1153_v63  ;;  %v1154_v1 = vmul.f32 0.0078125, %v1098_v54 }
 0x2dc   : > { %v1092_v24 = vpop.xlane.xlu0 %1091 }
 0x2dd   : > { %1843 = vrsqrt.f32 %v1185_v56  ;;  %v1186_v62 = vadd.f32 1e-05, %v1154_v1  ;;  %v1151_v3 = vmul.f32 0.0078125, %v1092_v24 }
 0x2de   : > { %v1094_v2 = vpop.xlane.xlu1 %1093 }
 0x2df   : > { %1845 = vrsqrt.f32 %v1186_v62  ;;  %v1183_v5 = vadd.f32 1e-05, %v1151_v3  ;;  %v1152_v49 = vmul.f32 0.0078125, %v1094_v2 }
 0x2e0   : > { %v1836_v8 = vpop.eup %1835  ;;  %v1104_v51 = vpop.xlane.xlu0 %1103 }
 0x2e1   : > { %v1245_v7 = vmul.f32 %v1836_v8, %v2297_v22  ;;  %1847 = vrsqrt.f32 %v1183_v5  ;;  %v1184_v9 = vadd.f32 1e-05, %v1152_v49  ;;  %v1157_v53 = vmul.f32 0.0078125, %v1104_v51 }
 0x2e2   : > { %v1106_v25 = vpop.xlane.xlu1 %1105 }
 0x2e3   : > { %v1284_v13 = vmul.f32 %v2459_v10, %v1245_v7  ;;  %1849 = vrsqrt.f32 %v1184_v9  ;;  %v1189_v12 = vadd.f32 1e-05, %v1157_v53  ;;  %v1158_v32 = vmul.f32 0.0078125, %v1106_v25 }
 0x2e4   : > { %v1838_v34 = vpop.eup %1837  ;;  %v1100_v57 = vpop.xlane.xlu0 %1099 }
 0x2e5   : > { %v1840_v16 = vpop.eup %1839  ;;  %v1323_v22 = vadd.f32 %v2466_v23, %v1284_v13  ;;  %v1246_v30 = vmul.f32 %v1838_v34, %v2305_v14  ;;  %1851 = vrsqrt.f32 %v1189_v12  ;;  %v1190_v59 = vadd.f32 1e-05, %v1158_v32 }
 0x2e6   : > { %v1243_v42 = vmul.f32 %v1840_v16, %v2300_v27  ;;  %v1155_v44 = vmul.f32 0.0078125, %v1100_v57  ;;  %v1102_v61 = vpop.xlane.xlu1 %1101 }
 0x2e7   : > { %vm1355_vm1 = vcmp.ge.f32.partialorder %v1323_v22, 0.0  ;;  %v1387_v15 = vmul.f32 0.01, %v1323_v22  ;;  %v1285_v48 = vmul.f32 %v2459_v10, %v1246_v30  ;;  %1853 = vrsqrt.f32 %v1190_v59 }
 0x2e8   : > { %v1842_v21 = vpop.eup %1841  ;;  %v1282_v63 = vmul.f32 %v2459_v10, %v1243_v42  ;;  %v1187_v54 = vadd.f32 1e-05, %v1155_v44  ;;  %v1156_v56 = vmul.f32 0.0078125, %v1102_v61  ;;  %v1112_v1 = vpop.xlane.xlu0 %1111 }
 0x2e9   : > { %v1419_v24 = vsel %vm1355_vm1, %v1323_v22, %v1387_v15  ;;  %v1324_v14 = vadd.f32 %v2466_v23, %v1285_v48  ;;  %v1244_v62 = vmul.f32 %v1842_v21, %v2308_v38  ;;  %v1161_v3 = vmul.f32 0.0078125, %v1112_v1 }
 0x2ea   : > { %v1844_v27 = vpop.eup %1843  ;;  %1451 = vst [vmem:[%s2478_s29 + $0x10] sm:$0xff] %v1419_v24  ;;  %v1321_v2 = vadd.f32 %v2466_v23, %v1282_v63  ;;  %1855 = vrsqrt.f32 %v1187_v54  ;;  %v1188_v5 = vadd.f32 1e-05, %v1156_v56  ;;  %v1114_v49 = vpop.xlane.xlu1 %1113 }
 0x2eb   : > { %vm1356_vm2 = vcmp.ge.f32.partialorder %v1324_v14, 0.0  ;;  %v1388_v8 = vmul.f32 0.01, %v1324_v14  ;;  %v1283_v51 = vmul.f32 %v2459_v10, %v1244_v62  ;;  %v1249_v7 = vmul.f32 %v1844_v27, %v2315_v46 }
 0x2ec   : > { %v1846_v9 = vpop.eup %1845  ;;  %vm1353_vm3 = vcmp.ge.f32.partialorder %v1321_v2, 0.0  ;;  %v1385_v38 = vmul.f32 0.01, %v1321_v2  ;;  %1857 = vrsqrt.f32 %v1188_v5  ;;  %v1193_v53 = vadd.f32 1e-05, %v1161_v3  ;;  %v1108_v25 = vpop.xlane.xlu0 %1107 }
 0x2ed   : > { %v1420_v13 = vsel %vm1356_vm2, %v1324_v14, %v1388_v8  ;;  %v1322_v12 = vadd.f32 %v2466_v23, %v1283_v51  ;;  %v1288_v32 = vmul.f32 %v2459_v10, %v1249_v7  ;;  %v1250_v34 = vmul.f32 %v1846_v9, %v2320_v50 }
 0x2ee   : > { %v1848_v57 = vpop.eup %1847  ;;  %1452 = vst [vmem:[%s2478_s29 + $0x18] sm:$0xff] %v1420_v13  ;;  %v1417_v16 = vsel %vm1353_vm3, %v1321_v2, %v1385_v38  ;;  %1859 = vrsqrt.f32 %v1193_v53  ;;  %v1162_v22 = vmul.f32 0.0078125, %v1114_v49  ;;  %v1159_v46 = vmul.f32 0.0078125, %v1108_v25  ;;  %v1110_v30 = vpop.xlane.xlu1 %1109 }
 0x2ef   : > { %1449 = vst [vmem:[%s2478_s29] sm:$0xff] %v1417_v16  ;;  %vm1354_vm4 = vcmp.ge.f32.partialorder %v1322_v12, 0.0  ;;  %v1386_v59 = vmul.f32 0.01, %v1322_v12  ;;  %v1327_v42 = vadd.f32 %v2466_v23, %v1288_v32  ;;  %v1289_v44 = vmul.f32 %v2459_v10, %v1250_v34 }
 0x2f0   : > { %v1850_v61 = vpop.eup %1849  ;;  %v1247_v15 = vmul.f32 %v1848_v57, %v2325_v58  ;;  %v1194_v48 = vadd.f32 1e-05, %v1162_v22  ;;  %v1191_v50 = vadd.f32 1e-05, %v1159_v46  ;;  %v1160_v21 = vmul.f32 0.0078125, %v1110_v30  ;;  %v1120_v63 = vpop.xlane.xlu0 %1119 }
 0x2f1   : > { %v1418_v54 = vsel %vm1354_vm4, %v1322_v12, %v1386_v59  ;;  %vm1359_vm5 = vcmp.ge.f32.partialorder %v1327_v42, 0.0  ;;  %v1391_v56 = vmul.f32 0.01, %v1327_v42  ;;  %v1328_v1 = vadd.f32 %v2466_v23, %v1289_v44 }
 0x2f2   : > { %v1852_v24 = vpop.eup %1851  ;;  %1450 = vst [vmem:[%s2478_s29 + $0x8] sm:$0xff] %v1418_v54  ;;  %v1286_v14 = vmul.f32 %v2459_v10, %v1247_v15  ;;  %v1248_v62 = vmul.f32 %v1850_v61, %v2330_v0  ;;  %1861 = vrsqrt.f32 %v1194_v48  ;;  %v1192_v3 = vadd.f32 1e-05, %v1160_v21  ;;  %v1122_v27 = vpop.xlane.xlu1 %1121 }
 0x2f3   : > { %v1423_v58 = vsel %vm1359_vm5, %v1327_v42, %v1391_v56  ;;  %vm1360_vm6 = vcmp.ge.f32.partialorder %v1328_v1, 0.0  ;;  %v1392_v2 = vmul.f32 0.01, %v1328_v1  ;;  %v1253_v5 = vmul.f32 %v1852_v24, %v2335_v6 }
 0x2f4   : > { %v1854_v49 = vpop.eup %1853  ;;  %1455 = vst [vmem:[%s2478_s29 + $0x30] sm:$0xff] %v1423_v58  ;;  %v1325_v8 = vadd.f32 %v2466_v23, %v1286_v14  ;;  %v1287_v51 = vmul.f32 %v2459_v10, %v1248_v62  ;;  %1863 = vrsqrt.f32 %v1191_v50  ;;  %v1165_v7 = vmul.f32 0.0078125, %v1120_v63  ;;  %v1116_v9 = vpop.xlane.xlu0 %1115 }
 0x2f5   : > { %v1424_v38 = vsel %vm1360_vm6, %v1328_v1, %v1392_v2  ;;  %v1292_v0 = vmul.f32 %v2459_v10, %v1253_v5  ;;  %v1254_v53 = vmul.f32 %v1854_v49, %v2340_v11  ;;  %1865 = vrsqrt.f32 %v1192_v3 }
 0x2f6   : > { %1456 = vst [vmem:[%s2478_s29 + $0x38] sm:$0xff] %v1424_v38  ;;  %vm1357_vm7 = vcmp.ge.f32.partialorder %v1325_v8, 0.0  ;;  %v1389_v25 = vmul.f32 0.01, %v1325_v8  ;;  %v1326_v6 = vadd.f32 %v2466_v23, %v1287_v51  ;;  %v1197_v13 = vadd.f32 1e-05, %v1165_v7  ;;  %v1118_v12 = vpop.xlane.xlu1 %1117 }
 0x2f7   : > { %v1856_v32 = vpop.eup %1855  ;;  %v1331_v34 = vadd.f32 %v2466_v23, %v1292_v0  ;;  %v1293_v57 = vmul.f32 %v2459_v10, %v1254_v53  ;;  %v1166_v16 = vmul.f32 0.0078125, %v1122_v27  ;;  %v1163_v22 = vmul.f32 0.0078125, %v1116_v9 }
 0x2f8   : > { %v1421_v46 = vsel %vm1357_vm7, %v1325_v8, %v1389_v25  ;;  %vm1358_vm8 = vcmp.ge.f32.partialorder %v1326_v6, 0.0  ;;  %v1390_v11 = vmul.f32 0.01, %v1326_v6  ;;  %v1251_v30 = vmul.f32 %v1856_v32, %v2345_v20  ;;  %v1128_v59 = vpop.xlane.xlu0 %1127 }
 0x2f9   : > { %v1858_v42 = vpop.eup %1857  ;;  %1453 = vst [vmem:[%s2478_s29 + $0x20] sm:$0xff] %v1421_v46  ;;  %vm1363_vm9 = vcmp.ge.f32.partialorder %v1331_v34, 0.0  ;;  %v1395_v44 = vmul.f32 0.01, %v1331_v34  ;;  %v1332_v61 = vadd.f32 %v2466_v23, %v1293_v57  ;;  %1867 = vrsqrt.f32 %v1197_v13 }
 0x2fa   : > { %v1422_v15 = vsel %vm1358_vm8, %v1326_v6, %v1390_v11  ;;  %v1290_v48 = vmul.f32 %v2459_v10, %v1251_v30  ;;  %v1252_v50 = vmul.f32 %v1858_v42, %v2350_v29  ;;  %v1198_v21 = vadd.f32 1e-05, %v1166_v16  ;;  %v1130_v63 = vpop.xlane.xlu1 %1129 }
 0x2fb   : > { %v1860_v54 = vpop.eup %1859  ;;  %1454 = vst [vmem:[%s2478_s29 + $0x28] sm:$0xff] %v1422_v15  ;;  %v1427_v20 = vsel %vm1363_vm9, %v1331_v34, %v1395_v44  ;;  %vm1364_vm10 = vcmp.ge.f32.partialorder %v1332_v61, 0.0  ;;  %v1396_v56 = vmul.f32 0.01, %v1332_v61  ;;  %v1195_v1 = vadd.f32 1e-05, %v1163_v22 }
 0x2fc   : > { %1459 = vst [vmem:[%s2478_s29 + $0x50] sm:$0xff] %v1427_v20  ;;  %v1329_v24 = vadd.f32 %v2466_v23, %v1290_v48  ;;  %v1291_v14 = vmul.f32 %v2459_v10, %v1252_v50  ;;  %v1257_v62 = vmul.f32 %v1860_v54, %v2355_v36  ;;  %1869 = vrsqrt.f32 %v1198_v21  ;;  %v1124_v3 = vpop.xlane.xlu0 %1123 }
 0x2fd   : > { %v1428_v27 = vsel %vm1364_vm10, %v1332_v61, %v1396_v56  ;;  %1871 = vrsqrt.f32 %v1195_v1  ;;  %v1164_v29 = vmul.f32 0.0078125, %v1118_v12  ;;  %v1169_v58 = vmul.f32 0.0078125, %v1128_v59 }
 0x2fe   : > { %1460 = vst [vmem:[%s2478_s29 + $0x58] sm:$0xff] %v1428_v27  ;;  %vm1361_vm11 = vcmp.ge.f32.partialorder %v1329_v24, 0.0  ;;  %v1393_v2 = vmul.f32 0.01, %v1329_v24  ;;  %v1330_v5 = vadd.f32 %v2466_v23, %v1291_v14  ;;  %v1296_v49 = vmul.f32 %v2459_v10, %v1257_v62  ;;  %v1126_v8 = vpop.xlane.xlu1 %1125 }
 0x2ff   : > { %v1862_v51 = vpop.eup %1861  ;;  %v1196_v7 = vadd.f32 1e-05, %v1164_v29  ;;  %v1201_v9 = vadd.f32 1e-05, %v1169_v58  ;;  %v1170_v38 = vmul.f32 0.0078125, %v1130_v63  ;;  %v1167_v36 = vmul.f32 0.0078125, %v1124_v3 }
 0x300   : > { %v1425_v0 = vsel %vm1361_vm11, %v1329_v24, %v1393_v2  ;;  %vm1362_vm12 = vcmp.ge.f32.partialorder %v1330_v5, 0.0  ;;  %v1394_v53 = vmul.f32 0.01, %v1330_v5  ;;  %v1335_v25 = vadd.f32 %v2466_v23, %v1296_v49  ;;  %v1136_v6 = vpop.xlane.xlu0 %1135 }
 0x301   : > { %v1864_v13 = vpop.eup %1863  ;;  %1457 = vst [vmem:[%s2478_s29 + $0x40] sm:$0xff] %v1425_v0  ;;  %v1258_v12 = vmul.f32 %v1862_v51, %v2360_v40  ;;  %1873 = vrsqrt.f32 %v1196_v7  ;;  %v1202_v32 = vadd.f32 1e-05, %v1170_v38  ;;  %v1199_v34 = vadd.f32 1e-05, %v1167_v36 }
 0x302   : > { %v1866_v57 = vpop.eup %1865  ;;  %v1426_v16 = vsel %vm1362_vm12, %v1330_v5, %v1394_v53  ;;  %vm1367_vm13 = vcmp.ge.f32.partialorder %v1335_v25, 0.0  ;;  %v1399_v22 = vmul.f32 0.01, %v1335_v25  ;;  %v1255_v46 = vmul.f32 %v1864_v13, %v2365_v19  ;;  %v1138_v11 = vpop.xlane.xlu1 %1137 }
 0x303   : > { %1458 = vst [vmem:[%s2478_s29 + $0x48] sm:$0xff] %v1426_v16  ;;  %v1297_v30 = vmul.f32 %v2459_v10, %v1258_v12  ;;  %v1256_v59 = vmul.f32 %v1866_v57, %v2370_v52  ;;  %1875 = vrsqrt.f32 %v1201_v9  ;;  %v1168_v42 = vmul.f32 0.0078125, %v1126_v8 }
 0x304   : > { %v1431_v44 = vsel %vm1367_vm13, %v1335_v25, %v1399_v22  ;;  %v1294_v40 = vmul.f32 %v2459_v10, %v1255_v46  ;;  %1877 = vrsqrt.f32 %v1202_v32  ;;  %v1173_v61 = vmul.f32 0.0078125, %v1136_v6  ;;  %v1132_v15 = vpop.xlane.xlu0 %1131 }
 0x305   : > { %1463 = vst [vmem:[%s2478_s29 + $0x70] sm:$0xff] %v1431_v44  ;;  %v1336_v48 = vadd.f32 %v2466_v23, %v1297_v30  ;;  %v1295_v50 = vmul.f32 %v2459_v10, %v1256_v59  ;;  %1879 = vrsqrt.f32 %v1199_v34  ;;  %v1200_v19 = vadd.f32 1e-05, %v1168_v42 }
 0x306   : > { %v1868_v21 = vpop.eup %1867  ;;  %v1333_v63 = vadd.f32 %v2466_v23, %v1294_v40  ;;  %v1205_v54 = vadd.f32 1e-05, %v1173_v61  ;;  %v1174_v52 = vmul.f32 0.0078125, %v1138_v11  ;;  %v1171_v20 = vmul.f32 0.0078125, %v1132_v15  ;;  %v1134_v3 = vpop.xlane.xlu1 %1133 }
 0x307   : > { %vm1368_vm14 = vcmp.ge.f32.partialorder %v1336_v48, 0.0  ;;  %v1400_v56 = vmul.f32 0.01, %v1336_v48  ;;  %v1334_v1 = vadd.f32 %v2466_v23, %v1295_v50  ;;  %v1261_v24 = vmul.f32 %v1868_v21, %v2375_v60 }
 0x308   : > { %vm1365_vm15 = vcmp.ge.f32.partialorder %v1333_v63, 0.0  ;;  %v1397_v14 = vmul.f32 0.01, %v1333_v63  ;;  %1881 = vrsqrt.f32 %v1200_v19  ;;  %v1206_v62 = vadd.f32 1e-05, %v1174_v52  ;;  %v1140_v27 = vpop.xlane.xlu0 %1139 }
 0x309   : > { %v1870_v29 = vpop.eup %1869  ;;  %v1432_v58 = vsel %vm1368_vm14, %v1336_v48, %v1400_v56  ;;  %vm1366_vm0 = vcmp.ge.f32.partialorder %v1334_v1, 0.0  ;;  %v1398_v2 = vmul.f32 0.01, %v1334_v1  ;;  %v1300_v5 = vmul.f32 %v2459_v10, %v1261_v24 }
 0x30a   : > { %v1872_v49 = vpop.eup %1871  ;;  %1464 = vst [vmem:[%s2478_s29 + $0x78] sm:$0xff] %v1432_v58  ;;  %v1429_v8 = vsel %vm1365_vm15, %v1333_v63, %v1397_v14  ;;  %v1262_v51 = vmul.f32 %v1870_v29, %v2380_v26  ;;  %1883 = vrsqrt.f32 %v1205_v54  ;;  %v1203_v60 = vadd.f32 1e-05, %v1171_v20 }
 0x30b   : > { %1461 = vst [vmem:[%s2478_s29 + $0x60] sm:$0xff] %v1429_v8  ;;  %v1430_v7 = vsel %vm1366_vm0, %v1334_v1, %v1398_v2  ;;  %v1339_v9 = vadd.f32 %v2466_v23, %v1300_v5  ;;  %v1259_v38 = vmul.f32 %v1872_v49, %v2385_v28  ;;  %1885 = vrsqrt.f32 %v1206_v62 }
 0x30c   : > { %1462 = vst [vmem:[%s2478_s29 + $0x68] sm:$0xff] %v1430_v7  ;;  %v1301_v36 = vmul.f32 %v2459_v10, %v1262_v51  ;;  %1887 = vrsqrt.f32 %v1203_v60  ;;  %v1172_v0 = vmul.f32 0.0078125, %v1134_v3  ;;  %v1175_v53 = vmul.f32 0.0078125, %v1140_v27  ;;  %v1142_v25 = vpop.xlane.xlu1 %1141  ;;  %v1144_v6 = vpop.xlane.xlu0 %1143 }
 0x30d   : > { %vm1371_vm1 = vcmp.ge.f32.partialorder %v1339_v9, 0.0  ;;  %v1403_v26 = vmul.f32 0.01, %v1339_v9  ;;  %v1298_v13 = vmul.f32 %v2459_v10, %v1259_v38  ;;  %v1176_v12 = vmul.f32 0.0078125, %v1142_v25 }
 0x30e   : > { %v1874_v32 = vpop.eup %1873  ;;  %v1340_v34 = vadd.f32 %v2466_v23, %v1301_v36  ;;  %v1204_v57 = vadd.f32 1e-05, %v1172_v0  ;;  %v1207_v28 = vadd.f32 1e-05, %v1175_v53  ;;  %v1177_v16 = vmul.f32 0.0078125, %v1144_v6 }
 0x30f   : > { %v1435_v22 = vsel %vm1371_vm1, %v1339_v9, %v1403_v26  ;;  %v1337_v46 = vadd.f32 %v2466_v23, %v1298_v13  ;;  %v1260_v11 = vmul.f32 %v1874_v32, %v2390_v31  ;;  %v1208_v30 = vadd.f32 1e-05, %v1176_v12 }
 0x310   : > { %v1876_v59 = vpop.eup %1875  ;;  %1467 = vst [vmem:[%s2478_s29 + $0x90] sm:$0xff] %v1435_v22  ;;  %vm1372_vm2 = vcmp.ge.f32.partialorder %v1340_v34, 0.0  ;;  %v1404_v42 = vmul.f32 0.01, %v1340_v34  ;;  %1889 = vrsqrt.f32 %v1204_v57  ;;  %v1209_v44 = vadd.f32 1e-05, %v1177_v16  ;;  %v1146_v40 = vpop.xlane.xlu1 %1145 }
 0x311   : > { %v1878_v61 = vpop.eup %1877  ;;  %vm1369_vm3 = vcmp.ge.f32.partialorder %v1337_v46, 0.0  ;;  %v1401_v15 = vmul.f32 0.01, %v1337_v46  ;;  %v1299_v48 = vmul.f32 %v2459_v10, %v1260_v11  ;;  %v1265_v50 = vmul.f32 %v1876_v59, %v2395_v33 }
 0x312   : > { %v1880_v19 = vpop.eup %1879  ;;  %v1436_v21 = vsel %vm1372_vm2, %v1340_v34, %v1404_v42  ;;  %v1266_v31 = vmul.f32 %v1878_v61, %v2400_v35  ;;  %1891 = vrsqrt.f32 %v1207_v28  ;;  %v1178_v63 = vmul.f32 0.0078125, %v1146_v40 }
 0x313   : > { %1468 = vst [vmem:[%s2478_s29 + $0x98] sm:$0xff] %v1436_v21  ;;  %v1433_v54 = vsel %vm1369_vm3, %v1337_v46, %v1401_v15  ;;  %v1338_v52 = vadd.f32 %v2466_v23, %v1299_v48  ;;  %v1304_v20 = vmul.f32 %v2459_v10, %v1265_v50  ;;  %v1263_v56 = vmul.f32 %v1880_v19, %v2405_v37 }
 0x314   : > { %1465 = vst [vmem:[%s2478_s29 + $0x80] sm:$0xff] %v1433_v54  ;;  %v1305_v1 = vmul.f32 %v2459_v10, %v1266_v31  ;;  %1893 = vrsqrt.f32 %v1208_v30  ;;  %v1210_v27 = vadd.f32 1e-05, %v1178_v63 }
 0x315   : > { %v1882_v33 = vpop.eup %1881  ;;  %vm1370_vm4 = vcmp.ge.f32.partialorder %v1338_v52, 0.0  ;;  %v1402_v24 = vmul.f32 0.01, %v1338_v52  ;;  %v1343_v35 = vadd.f32 %v2466_v23, %v1304_v20  ;;  %v1302_v14 = vmul.f32 %v2459_v10, %v1263_v56 }
 0x316   : > { %v1344_v62 = vadd.f32 %v2466_v23, %v1305_v1  ;;  %v1264_v3 = vmul.f32 %v1882_v33, %v2410_v39  ;;  %1895 = vrsqrt.f32 %v1209_v44 }
 0x317   : > { %v1884_v29 = vpop.eup %1883  ;;  %v1434_v37 = vsel %vm1370_vm4, %v1338_v52, %v1402_v24  ;;  %vm1375_vm5 = vcmp.ge.f32.partialorder %v1343_v35, 0.0  ;;  %v1407_v58 = vmul.f32 0.01, %v1343_v35  ;;  %v1341_v2 = vadd.f32 %v2466_v23, %v1302_v14 }
 0x318   : > { %v1886_v5 = vpop.eup %1885  ;;  %1466 = vst [vmem:[%s2478_s29 + $0x88] sm:$0xff] %v1434_v37  ;;  %vm1376_vm6 = vcmp.ge.f32.partialorder %v1344_v62, 0.0  ;;  %v1408_v49 = vmul.f32 0.01, %v1344_v62  ;;  %v1303_v8 = vmul.f32 %v2459_v10, %v1264_v3  ;;  %v1269_v51 = vmul.f32 %v1884_v29, %v2415_v41 }
 0x319   : > { %v1888_v39 = vpop.eup %1887  ;;  %v1439_v60 = vsel %vm1375_vm5, %v1343_v35, %v1407_v58  ;;  %vm1373_vm7 = vcmp.ge.f32.partialorder %v1341_v2, 0.0  ;;  %v1405_v7 = vmul.f32 0.01, %v1341_v2  ;;  %v1270_v9 = vmul.f32 %v1886_v5, %v2420_v43 }
 0x31a   : > { %1471 = vst [vmem:[%s2478_s29 + $0xb0] sm:$0xff] %v1439_v60  ;;  %v1440_v38 = vsel %vm1376_vm6, %v1344_v62, %v1408_v49  ;;  %v1342_v36 = vadd.f32 %v2466_v23, %v1303_v8  ;;  %v1308_v0 = vmul.f32 %v2459_v10, %v1269_v51  ;;  %v1267_v53 = vmul.f32 %v1888_v39, %v2425_v45 }
 0x31b   : > { %1472 = vst [vmem:[%s2478_s29 + $0xb8] sm:$0xff] %v1440_v38  ;;  %v1437_v25 = vsel %vm1373_vm7, %v1341_v2, %v1405_v7  ;;  %v1309_v6 = vmul.f32 %v2459_v10, %v1270_v9  ;;  %1897 = vrsqrt.f32 %v1210_v27 }
 0x31c   : > { %1469 = vst [vmem:[%s2478_s29 + $0xa0] sm:$0xff] %v1437_v25  ;;  %vm1374_vm8 = vcmp.ge.f32.partialorder %v1342_v36, 0.0  ;;  %v1406_v41 = vmul.f32 0.01, %v1342_v36  ;;  %v1347_v26 = vadd.f32 %v2466_v23, %v1308_v0  ;;  %v1306_v43 = vmul.f32 %v2459_v10, %v1267_v53 }
 0x31d   : > { %v1890_v13 = vpop.eup %1889  ;;  %v1348_v12 = vadd.f32 %v2466_v23, %v1309_v6 }
 0x31e   : > { %v1438_v32 = vsel %vm1374_vm8, %v1342_v36, %v1406_v41  ;;  %vm1379_vm9 = vcmp.ge.f32.partialorder %v1347_v26, 0.0  ;;  %v1411_v45 = vmul.f32 0.01, %v1347_v26  ;;  %v1345_v34 = vadd.f32 %v2466_v23, %v1306_v43 }
 0x31f   : > { %v1892_v57 = vpop.eup %1891  ;;  %1470 = vst [vmem:[%s2478_s29 + $0xa8] sm:$0xff] %v1438_v32  ;;  %vm1380_vm10 = vcmp.ge.f32.partialorder %v1348_v12, 0.0  ;;  %v1412_v28 = vmul.f32 0.01, %v1348_v12  ;;  %v1268_v16 = vmul.f32 %v1890_v13, %v2430_v47 }
 0x320   : > { %v1443_v22 = vsel %vm1379_vm9, %v1347_v26, %v1411_v45  ;;  %vm1377_vm11 = vcmp.ge.f32.partialorder %v1345_v34, 0.0  ;;  %v1409_v46 = vmul.f32 0.01, %v1345_v34  ;;  %v1271_v11 = vmul.f32 %v1892_v57, %v2435_v4 }
 0x321   : > { %v1894_v30 = vpop.eup %1893  ;;  %1475 = vst [vmem:[%s2478_s29 + $0xd0] sm:$0xff] %v1443_v22  ;;  %v1444_v59 = vsel %vm1380_vm10, %v1348_v12, %v1412_v28  ;;  %v1307_v42 = vmul.f32 %v2459_v10, %v1268_v16 }
 0x322   : > { %1476 = vst [vmem:[%s2478_s29 + $0xd8] sm:$0xff] %v1444_v59  ;;  %v1441_v44 = vsel %vm1377_vm11, %v1345_v34, %v1409_v46  ;;  %v1310_v40 = vmul.f32 %v2459_v10, %v1271_v11  ;;  %v1272_v61 = vmul.f32 %v1894_v30, %v2442_v17 }
 0x323   : > { %v1896_v15 = vpop.eup %1895  ;;  %1473 = vst [vmem:[%s2478_s29 + $0xc0] sm:$0xff] %v1441_v44  ;;  %v1346_v47 = vadd.f32 %v2466_v23, %v1307_v42 }
 0x324   : > { %v1349_v48 = vadd.f32 %v2466_v23, %v1310_v40  ;;  %v1311_v4 = vmul.f32 %v2459_v10, %v1272_v61  ;;  %v1273_v50 = vmul.f32 %v1896_v15, %v2445_v18 }
 0x325   : > { %vm1378_vm12 = vcmp.ge.f32.partialorder %v1346_v47, 0.0  ;;  %v1410_v19 = vmul.f32 0.01, %v1346_v47 }
 0x326   : > { %vm1381_vm13 = vcmp.ge.f32.partialorder %v1349_v48, 0.0  ;;  %v1413_v21 = vmul.f32 0.01, %v1349_v48  ;;  %v1350_v31 = vadd.f32 %v2466_v23, %v1311_v4  ;;  %v1312_v17 = vmul.f32 %v2459_v10, %v1273_v50 }
 0x327   : > { %v1442_v63 = vsel %vm1378_vm12, %v1346_v47, %v1410_v19 }
 0x328   : > { %v1898_v54 = vpop.eup %1897  ;;  %1474 = vst [vmem:[%s2478_s29 + $0xc8] sm:$0xff] %v1442_v63  ;;  %v1445_v52 = vsel %vm1381_vm13, %v1349_v48, %v1413_v21  ;;  %vm1382_vm14 = vcmp.ge.f32.partialorder %v1350_v31, 0.0  ;;  %v1414_v20 = vmul.f32 0.01, %v1350_v31  ;;  %v1351_v18 = vadd.f32 %v2466_v23, %v1312_v17 }
 0x329   : > { %1477 = vst [vmem:[%s2478_s29 + $0xe0] sm:$0xff] %v1445_v52  ;;  %v1274_v56 = vmul.f32 %v1898_v54, %v2452_v55 }
 0x32a   : > { %v1446_v1 = vsel %vm1382_vm14, %v1350_v31, %v1414_v20  ;;  %vm1383_vm15 = vcmp.ge.f32.partialorder %v1351_v18, 0.0  ;;  %v1415_v33 = vmul.f32 0.01, %v1351_v18 }
 0x32b   : > { %1478 = vst [vmem:[%s2478_s29 + $0xe8] sm:$0xff] %v1446_v1  ;;  %v1313_v24 = vmul.f32 %v2459_v10, %v1274_v56 }
 0x32c   : > { %v1447_v35 = vsel %vm1383_vm15, %v1351_v18, %v1415_v33 }
 0x32d   : > { %1479 = vst [vmem:[%s2478_s29 + $0xf0] sm:$0xff] %v1447_v35  ;;  %v1352_v14 = vadd.f32 %v2466_v23, %v1313_v24 }
 0x32f   : > { %vm1384_vm0 = vcmp.ge.f32.partialorder %v1352_v14, 0.0  ;;  %v1416_v62 = vmul.f32 0.01, %v1352_v14 }
 0x331   : > { %v1448_v55 = vsel %vm1384_vm0, %v1352_v14, %v1416_v62 }
 0x332   : > { %1480 = vst [vmem:[%s2478_s29 + $0xf8] sm:$0xff] %v1448_v55 }
 0x333   : > { %1912 = shalt.err (!%p1909_p3)
}
 0x334   : > { %s1913_s20 = scalar_lea.hbm %s2603_s16, 4096  ;;  %s1917_s23 = scalar_lea.hbm %s2657_s7, 8192 }
 0x335   : > { %p1914_p4 = scmp.ne.s32.totalorder %s2603_s16, %s1913_s20  ;;  %p1918_p9 = scmp.lt.s32.totalorder %s2603_s16, %s2657_s7 }
 0x336   : > { %p1919_p10 = scmp.lt.s32.totalorder %s1917_s23, %s1913_s20 }
 0x337   : > { %p1915_p7 = pnand %p1914_p4, %p2042_p5 }
 0x338   : > { %p1920_p11 = por %p1919_p10, %p1918_p9 }
 0x339   : > { %p1916_p8 = pneg %p1915_p7 }
 0x33b   : > { %p1921_p12 = pnand %p1920_p11, %p1916_p8 }
 0x33d   : > { %1924 = shalt.err (!%p1921_p12)
}
 0x33e   : > { %s1962_s14 = smov 128   ;;  %s1963_s15 = smov 8  }
 0x33f   : > { %1766 = dma.vmem_to_hbm [thread:$0]  (%p2042_p5), %s2605_s13, 4096, %s2603_s16, %s2610_s28, %s1962_s14, %s1962_s14, %s1963_s15  }
 0x340 PF: > { %p1772_p13 = scmp.ge.s32.totalorder %s1959_s27, 2  ;;  %s1510_s8 = sand.u32 1, %s1947_s24  }
 0x341   : > { %s1511_s17 = scalar_lea.sflag [#allocation3], %s1510_s8 }
 0x342   : > { %p1769_p0 = pnand %p1772_p13, %p2046_p6 }
 0x344   : > { %p1770_p1 = pneg %p1769_p0 }
 0x346   : > { %1942 = dma.done.wait (%p1770_p1), %s1511_s17, 4096  }
 0x347   : > { %1944 = vsyncadd (%p1770_p1), %s1511_s17, 4294963200  ;;  %p17_p2 = scmp.ge.s32.totalorder %s2029_s30, 4   ;;  %s2660_s24 = smov %s1951_s25 }
 0x348   : > { %s2661_s25 = smov %s1955_s26  ;;  %s2662_s26 = smov %s2040_s10 }
 0x349   : > { %s2663_s27 = smov %s2029_s30  ;;  %19 = sbr.rel (!%p17_p2) target bundleno = 3 (0x3), region = 83 }
 0x34e   :  { %1516 = vsyncpa [#allocation3], 1 }
 0x34f   :  { %1518 = vsyncpa [#allocation3 + $0x1], 1 }

</bundles_post_ra>
